<compile_context>
chip_gen: v5e
topology: v5e:2x2
jax: 0.10.0
libtpu: 0.0.40
codegen_flags: <defaults>
</compile_context>

<pallas_src>
import jax
import jax.numpy as jnp
from jax import lax
from jax.experimental import pallas as pl
from jax.experimental.pallas import tpu as pltpu

# ----- small synthetic Qwen2 config -----
B, T = 2, 8
HIDDEN = 64
N_HEADS = 4
N_KV_HEADS = 2
HEAD_DIM = HIDDEN // N_HEADS          # 16
GROUP = N_HEADS // N_KV_HEADS         # 2
Q_DIM = N_HEADS * HEAD_DIM            # 64
KV_DIM = N_KV_HEADS * HEAD_DIM        # 32
QKV_DIM = 3 * Q_DIM                   # 192 (K/V expanded to full head count)
INTER = 128
GU_DIM = 2 * INTER                    # 256 (fused gate|up output)
N_LAYERS = 2
RMS_EPS = 1e-6
ROPE_THETA = 10000.0
NEG_INF = -1e30
BT = B * T                            # flattened batch*seq rows


# ------------------------- fused Pallas kernel -------------------------

def _qwen2_stack_kernel(x_ref, bias_ref, cos_ref, sin_ref, rot_ref,
                        norms_ref, wqkv_ref, bqkv_ref, wo_ref,
                        wgu_ref, wd_ref, o_ref):
    """Full N_LAYERS decoder stack over the flattened [B*T, H] slab in VMEM."""
    bf = jnp.bfloat16
    f32 = jnp.float32

    h = x_ref[...]                     # [BT, H]   f32, resident for whole stack
    bias = bias_ref[...]               # [BT, BT]  block-diag causal+pad bias
    cos = cos_ref[...]                 # [BT, Q_DIM]
    sin = sin_ref[...]                 # [BT, Q_DIM]
    rot = rot_ref[...]                 # [Q_DIM, Q_DIM] bf16 rotate-half matrix
    norms = norms_ref[...]             # [2L+1, H]  (ln1 x L, ln2 x L, final)
    b_qkv = bqkv_ref[...]              # [L, QKV_DIM] f32 (scale folded in)
    wqkv = wqkv_ref[...]               # [L, H, QKV_DIM]  bf16
    wo = wo_ref[...]                   # [L*N_HEADS, HEAD_DIM, H] bf16
    wgu = wgu_ref[...]                 # [L, H, GU_DIM]   bf16
    wd = wd_ref[...]                   # [L, INTER, H]    bf16

    def rms(x, w):                     # RMSNorm, f32 elementwise; w: [1, H]
        var = jnp.mean(x * x, axis=-1, keepdims=True)
        return x * lax.rsqrt(var + RMS_EPS) * w

    def rope(x):                       # full-width RoPE: x*cos + (x @ Rot)*sin
        return x * cos + jnp.dot(x.astype(bf), rot,
                                 preferred_element_type=f32) * sin

    def split_heads(x):                # [BT, Q_DIM] -> [N_HEADS, BT, HEAD_DIM]
        return jnp.stack(
            [x[:, hh * HEAD_DIM:(hh + 1) * HEAD_DIM] for hh in range(N_HEADS)],
            axis=0).astype(bf)

    for l in range(N_LAYERS):          # static unroll over layers
        # ---------------- self-attention block ----------------
        resid = h
        hn = rms(h, norms[l:l + 1, :])
        qkv = jnp.dot(hn.astype(bf), wqkv[l],
                      preferred_element_type=f32) + b_qkv[l:l + 1, :]  # [BT, 192]
        q = rope(qkv[:, :Q_DIM])
        k = rope(qkv[:, Q_DIM:2 * Q_DIM])
        v = qkv[:, 2 * Q_DIM:]

        q3 = split_heads(q)            # [NH, BT, D] bf16
        k3 = split_heads(k)
        v3 = split_heads(v)

        # scores for all heads in one batched MXU call (scale folded into Wq)
        s = lax.dot_general(q3, k3, (((2,), (2,)), ((0,), (0,))),
                            preferred_element_type=f32)               # [NH, BT, BT]
        s = s + bias[None, :, :]
        s = s - jnp.max(s, axis=-1, keepdims=True)
        p = jnp.exp(s)
        p = p * pl.reciprocal(jnp.sum(p, axis=-1, keepdims=True), approx=True)

        ctx = lax.dot_general(p.astype(bf), v3, (((2,), (1,)), ((0,), (0,))),
                              preferred_element_type=f32)             # [NH, BT, D]
        # per-head output projection, summed over heads -> [BT, H]
        attn = lax.dot_general(ctx.astype(bf),
                               wo[l * N_HEADS:(l + 1) * N_HEADS],
                               (((2,), (1,)), ((0,), (0,))),
                               preferred_element_type=f32)            # [NH, BT, H]
        h = resid + jnp.sum(attn, axis=0)

        # ---------------- SwiGLU MLP block ----------------
        resid = h
        hn = rms(h, norms[N_LAYERS + l:N_LAYERS + l + 1, :])
        gu = jnp.dot(hn.astype(bf), wgu[l],
                     preferred_element_type=f32)                      # [BT, 256]
        gate = gu[:, :INTER]
        up = gu[:, INTER:]
        mid = gate * jax.nn.sigmoid(gate) * up                        # SiLU(g)*u
        h = resid + jnp.dot(mid.astype(bf), wd[l],
                            preferred_element_type=f32)

    o_ref[...] = rms(h, norms[2 * N_LAYERS:2 * N_LAYERS + 1, :])      # final norm


# ------------------------- JAX glue -------------------------

def rope_cos_sin(seq_len, dim):
    inv_freq = 1.0 / (ROPE_THETA ** (jnp.arange(0, dim, 2, dtype=jnp.float32) / dim))
    t = jnp.arange(seq_len, dtype=jnp.float32)
    freqs = jnp.outer(t, inv_freq)                        # [T, D/2]
    emb = jnp.concatenate([freqs, freqs], axis=-1)        # [T, D]
    return jnp.cos(emb), jnp.sin(emb)


def _rotate_half_matrix():
    """Block-diagonal matrix P with x @ P == rotate_half(x) per head."""
    half = HEAD_DIM // 2
    idx = jnp.arange(half)
    blk = jnp.zeros((HEAD_DIM, HEAD_DIM), jnp.float32)
    blk = blk.at[idx + half, idx].set(-1.0)   # out[:half]  = -x[half:]
    blk = blk.at[idx, idx + half].set(1.0)    # out[half:]  =  x[:half]
    return jnp.kron(jnp.eye(N_HEADS, dtype=jnp.float32), blk)


def _full_spec(shape):
    nd = len(shape)
    return pl.BlockSpec(shape, lambda i, _nd=nd: (0,) * _nd)


@jax.jit
def qwen2_encoder_forward(xs, xs_lens, params):
    """Equivalent of Qwen2Encoder.forward(xs, xs_lens)."""
    Bq, Tq, H = xs.shape
    n_rows = Bq * Tq
    scale = 1.0 / (HEAD_DIM ** 0.5)

    # masks = ~make_pad_mask(xs_lens, T): True where t < length
    masks = jnp.arange(Tq)[None, :] < xs_lens[:, None]               # [B, T]

    # Block-diagonal additive bias over the flattened batch*seq axis:
    # attend only within the same batch element, causally, to non-padded keys.
    bidx = jnp.repeat(jnp.arange(Bq), Tq)                            # [BT]
    pos = jnp.tile(jnp.arange(Tq), Bq)                               # [BT]
    same = bidx[:, None] == bidx[None, :]
    causal = pos[None, :] <= pos[:, None]
    key_ok = (pos < xs_lens[bidx])[None, :]
    allowed = same & causal & key_ok
    bias = jnp.where(allowed, 0.0, NEG_INF).astype(jnp.float32)      # [BT, BT]

    # RoPE tables tiled to full Q width and over the flattened batch
    cos, sin = rope_cos_sin(Tq, HEAD_DIM)                            # [T, D]
    cos_q = jnp.tile(cos, (Bq, N_HEADS))                             # [BT, Q_DIM]
    sin_q = jnp.tile(sin, (Bq, N_HEADS))
    rot = _rotate_half_matrix().astype(jnp.bfloat16)                 # [Q_DIM, Q_DIM]

    # --- weight preprocessing (outside the kernel, once per call) ---
    def expand_kv_w(w):   # [L, H, KV_DIM] -> [L, H, Q_DIM] (one head / query head)
        return jnp.repeat(w.reshape(N_LAYERS, H, N_KV_HEADS, HEAD_DIM),
                          GROUP, axis=2).reshape(N_LAYERS, H, Q_DIM)

    def expand_kv_b(b):   # [L, KV_DIM] -> [L, Q_DIM]
        return jnp.repeat(b.reshape(N_LAYERS, N_KV_HEADS, HEAD_DIM),
                          GROUP, axis=1).reshape(N_LAYERS, Q_DIM)

    w_qkv = jnp.concatenate([params["w_q"] * scale,                  # scale folded
                             expand_kv_w(params["w_k"]),
                             expand_kv_w(params["w_v"])],
                            axis=-1).astype(jnp.bfloat16)            # [L, H, 192]
    b_qkv = jnp.concatenate([params["b_q"] * scale,
                             expand_kv_b(params["b_k"]),
                             expand_kv_b(params["b_v"])],
                            axis=-1).astype(jnp.float32)             # [L, 192]
    wo = params["wo"].reshape(N_LAYERS * N_HEADS, HEAD_DIM, H).astype(jnp.bfloat16)
    w_gu = jnp.concatenate([params["w_gate"], params["w_up"]],
                           axis=-1).astype(jnp.bfloat16)             # [L, H, 256]
    wd = params["wd"].astype(jnp.bfloat16)                           # [L, INTER, H]
    norms = jnp.concatenate([params["ln1"], params["ln2"],
                             params["final_norm"][None, :]], axis=0) # [2L+1, H]

    x2d = xs.reshape(n_rows, H)

    out2d = pl.pallas_call(
        _qwen2_stack_kernel,
        out_shape=jax.ShapeDtypeStruct((n_rows, H), jnp.float32),
        grid=(1,),
        in_specs=[
            _full_spec((n_rows, H)),                     # x
            _full_spec((n_rows, n_rows)),                # additive mask bias
            _full_spec((n_rows, Q_DIM)),                 # cos (tiled)
            _full_spec((n_rows, Q_DIM)),                 # sin (tiled)
            _full_spec((Q_DIM, Q_DIM)),                  # rotate-half matrix
            _full_spec((2 * N_LAYERS + 1, H)),           # packed norm weights
            _full_spec((N_LAYERS, H, QKV_DIM)),          # fused Wqkv (bf16)
            _full_spec((N_LAYERS, QKV_DIM)),             # fused bqkv
            _full_spec((N_LAYERS * N_HEADS, HEAD_DIM, H)),  # Wo per head (bf16)
            _full_spec((N_LAYERS, H, GU_DIM)),           # fused W(gate|up) (bf16)
            _full_spec((N_LAYERS, INTER, H)),            # Wdown (bf16)
        ],
        out_specs=_full_spec((n_rows, H)),
    )(x2d, bias, cos_q, sin_q, rot, norms, w_qkv, b_qkv, wo, w_gu, wd)

    # returns (hidden_states[-1], masks.unsqueeze(1))
    return out2d.reshape(Bq, Tq, H), masks[:, None, :]


def init_params(key):
    def nrm(k, shape):
        return 0.02 * jax.random.normal(k, shape, jnp.float32)

    ks = jax.random.split(key, 10)
    return dict(
        ln1=jnp.ones((N_LAYERS, HIDDEN), jnp.float32),
        w_q=nrm(ks[0], (N_LAYERS, HIDDEN, Q_DIM)),
        b_q=nrm(ks[1], (N_LAYERS, Q_DIM)),
        w_k=nrm(ks[2], (N_LAYERS, HIDDEN, KV_DIM)),
        b_k=nrm(ks[3], (N_LAYERS, KV_DIM)),
        w_v=nrm(ks[4], (N_LAYERS, HIDDEN, KV_DIM)),
        b_v=nrm(ks[5], (N_LAYERS, KV_DIM)),
        wo=nrm(ks[6], (N_LAYERS, Q_DIM, HIDDEN)),        # o_proj has no bias
        ln2=jnp.ones((N_LAYERS, HIDDEN), jnp.float32),
        w_gate=nrm(ks[7], (N_LAYERS, HIDDEN, INTER)),
        w_up=nrm(ks[8], (N_LAYERS, HIDDEN, INTER)),
        wd=nrm(ks[9], (N_LAYERS, INTER, HIDDEN)),
        final_norm=jnp.ones((HIDDEN,), jnp.float32),
    )


def reference_forward(xs, xs_lens, params):
    """Pure-JAX f32 GQA reference mirroring the fused kernel semantics."""
    Bq, Tq, H = xs.shape
    masks = jnp.arange(Tq)[None, :] < xs_lens[:, None]
    causal = jnp.tril(jnp.ones((Tq, Tq), dtype=bool))
    allowed = causal[None] & masks[:, None, :]
    bias = jnp.where(allowed, 0.0, NEG_INF)
    cos, sin = rope_cos_sin(Tq, HEAD_DIM)

    def rms(x, w):
        var = jnp.mean(x * x, axis=-1, keepdims=True)
        return x * lax.rsqrt(var + RMS_EPS) * w

    def rope4(x):  # [B, T, n, D]
        x1, x2 = jnp.split(x, 2, axis=-1)
        rot = jnp.concatenate([-x2, x1], axis=-1)
        return x * cos[None, :, None, :] + rot * sin[None, :, None, :]

    h = xs
    for l in range(N_LAYERS):
        resid = h
        hn = rms(h, params["ln1"][l])
        q = (hn @ params["w_q"][l] + params["b_q"][l]).reshape(Bq, Tq, N_HEADS, HEAD_DIM)
        k = (hn @ params["w_k"][l] + params["b_k"][l]).reshape(Bq, Tq, N_KV_HEADS, HEAD_DIM)
        v = (hn @ params["w_v"][l] + params["b_v"][l]).reshape(Bq, Tq, N_KV_HEADS, HEAD_DIM)
        q = rope4(q)
        k = jnp.repeat(rope4(k), GROUP, axis=2)
        v = jnp.repeat(v, GROUP, axis=2)
        s = jnp.einsum("bqhd,bkhd->bhqk", q, k) / (HEAD_DIM ** 0.5) + bias[:, None]
        p = jax.nn.softmax(s, axis=-1)
        a = jnp.einsum("bhqk,bkhd->bqhd", p, v).reshape(Bq, Tq, Q_DIM)
        h = resid + a @ params["wo"][l]
        resid = h
        hn = rms(h, params["ln2"][l])
        g_ = hn @ params["w_gate"][l]
        u_ = hn @ params["w_up"][l]
        h = resid + (g_ * jax.nn.sigmoid(g_) * u_) @ params["wd"][l]
    return rms(h, params["final_norm"]), masks[:, None, :]


if __name__ == "__main__":
    key = jax.random.PRNGKey(0)
    kx, kp = jax.random.split(key)
    xs = jax.random.normal(kx, (B, T, HIDDEN), jnp.float32)
    xs_lens = jnp.array([T, T - 3], dtype=jnp.int32)
    params = init_params(kp)

    out, masks = qwen2_encoder_forward(xs, xs_lens, params)
    jax.block_until_ready(out)
    jax.block_until_ready(masks)

    ref_out, ref_masks = reference_forward(xs, xs_lens, params)

    assert out.shape == (B, T, HIDDEN)
    assert masks.shape == (B, 1, T)
    assert bool(jnp.all(jnp.isfinite(out)))
    assert bool(jnp.all(masks == ref_masks))
    err = float(jnp.max(jnp.abs(out - ref_out)))
    assert err < 5e-2, f"max abs error vs reference: {err}"
    print("KERNEL_OK")
</pallas_src>

<mosaic_0001>
module attributes {stable_mosaic.version = 11 : i64} {
  func.func @_qwen2_stack_kernel(%arg0: i32, %arg1: memref<16x64xf32, #tpu.memory_space<vmem>>, %arg2: memref<16x16xf32, #tpu.memory_space<vmem>>, %arg3: memref<16x64xf32, #tpu.memory_space<vmem>>, %arg4: memref<16x64xf32, #tpu.memory_space<vmem>>, %arg5: memref<64x64xbf16, #tpu.memory_space<vmem>>, %arg6: memref<5x64xf32, #tpu.memory_space<vmem>>, %arg7: memref<2x64x192xbf16, #tpu.memory_space<vmem>>, %arg8: memref<2x192xf32, #tpu.memory_space<vmem>>, %arg9: memref<8x16x64xbf16, #tpu.memory_space<vmem>>, %arg10: memref<2x64x256xbf16, #tpu.memory_space<vmem>>, %arg11: memref<2x128x64xbf16, #tpu.memory_space<vmem>>, %arg12: memref<16x64xf32, #tpu.memory_space<vmem>>) attributes {dimension_semantics = [#tpu.dimension_semantics<arbitrary>], iteration_bounds = array<i64: 1>, scalar_prefetch = 0 : i64, scratch_operands = 0 : i64, tpu.core_type = #tpu.core_type<tc>, window_params = [{pipeline_mode = #tpu.pipeline_mode<synchronous>, transform_indices = @transform_0, window_bounds = array<i64: 16, 64>}, {pipeline_mode = #tpu.pipeline_mode<synchronous>, transform_indices = @transform_1, window_bounds = array<i64: 16, 16>}, {pipeline_mode = #tpu.pipeline_mode<synchronous>, transform_indices = @transform_2, window_bounds = array<i64: 16, 64>}, {pipeline_mode = #tpu.pipeline_mode<synchronous>, transform_indices = @transform_3, window_bounds = array<i64: 16, 64>}, {pipeline_mode = #tpu.pipeline_mode<synchronous>, transform_indices = @transform_4, window_bounds = array<i64: 64, 64>}, {pipeline_mode = #tpu.pipeline_mode<synchronous>, transform_indices = @transform_5, window_bounds = array<i64: 5, 64>}, {pipeline_mode = #tpu.pipeline_mode<synchronous>, transform_indices = @transform_6, window_bounds = array<i64: 2, 64, 192>}, {pipeline_mode = #tpu.pipeline_mode<synchronous>, transform_indices = @transform_7, window_bounds = array<i64: 2, 192>}, {pipeline_mode = #tpu.pipeline_mode<synchronous>, transform_indices = @transform_8, window_bounds = array<i64: 8, 16, 64>}, {pipeline_mode = #tpu.pipeline_mode<synchronous>, transform_indices = @transform_9, window_bounds = array<i64: 2, 64, 256>}, {pipeline_mode = #tpu.pipeline_mode<synchronous>, transform_indices = @transform_10, window_bounds = array<i64: 2, 128, 64>}, {pipeline_mode = #tpu.pipeline_mode<synchronous>, transform_indices = @transform_11, window_bounds = array<i64: 16, 64>}]} {
    %c0 = arith.constant 0 : index
    %c0_0 = arith.constant 0 : index
    %0 = vector.load %arg1[%c0, %c0_0] : memref<16x64xf32, #tpu.memory_space<vmem>>, vector<16x64xf32>
    %c0_1 = arith.constant 0 : index
    %c0_2 = arith.constant 0 : index
    %1 = vector.load %arg2[%c0_1, %c0_2] : memref<16x16xf32, #tpu.memory_space<vmem>>, vector<16x16xf32>
    %c0_3 = arith.constant 0 : index
    %c0_4 = arith.constant 0 : index
    %2 = vector.load %arg3[%c0_3, %c0_4] : memref<16x64xf32, #tpu.memory_space<vmem>>, vector<16x64xf32>
    %c0_5 = arith.constant 0 : index
    %c0_6 = arith.constant 0 : index
    %3 = vector.load %arg4[%c0_5, %c0_6] : memref<16x64xf32, #tpu.memory_space<vmem>>, vector<16x64xf32>
    %c0_7 = arith.constant 0 : index
    %c0_8 = arith.constant 0 : index
    %4 = vector.load %arg5[%c0_7, %c0_8] : memref<64x64xbf16, #tpu.memory_space<vmem>>, vector<64x64xbf16>
    %c0_9 = arith.constant 0 : index
    %c0_10 = arith.constant 0 : index
    %5 = vector.load %arg6[%c0_9, %c0_10] : memref<5x64xf32, #tpu.memory_space<vmem>>, vector<5x64xf32>
    %c0_11 = arith.constant 0 : index
    %c0_12 = arith.constant 0 : index
    %6 = vector.load %arg8[%c0_11, %c0_12] : memref<2x192xf32, #tpu.memory_space<vmem>>, vector<2x192xf32>
    %c0_13 = arith.constant 0 : index
    %c0_14 = arith.constant 0 : index
    %c0_15 = arith.constant 0 : index
    %7 = vector.load %arg7[%c0_13, %c0_14, %c0_15] : memref<2x64x192xbf16, #tpu.memory_space<vmem>>, vector<2x64x192xbf16>
    %c0_16 = arith.constant 0 : index
    %c0_17 = arith.constant 0 : index
    %c0_18 = arith.constant 0 : index
    %8 = vector.load %arg9[%c0_16, %c0_17, %c0_18] : memref<8x16x64xbf16, #tpu.memory_space<vmem>>, vector<8x16x64xbf16>
    %c0_19 = arith.constant 0 : index
    %c0_20 = arith.constant 0 : index
    %c0_21 = arith.constant 0 : index
    %9 = vector.load %arg10[%c0_19, %c0_20, %c0_21] : memref<2x64x256xbf16, #tpu.memory_space<vmem>>, vector<2x64x256xbf16>
    %c0_22 = arith.constant 0 : index
    %c0_23 = arith.constant 0 : index
    %c0_24 = arith.constant 0 : index
    %10 = vector.load %arg11[%c0_22, %c0_23, %c0_24] : memref<2x128x64xbf16, #tpu.memory_space<vmem>>, vector<2x128x64xbf16>
    %11 = vector.extract_strided_slice %5 {offsets = [0, 0], sizes = [1, 64], strides = [1, 1]} : vector<5x64xf32> to vector<1x64xf32>
    %12 = arith.mulf %0, %0 : vector<16x64xf32>
    %cst = arith.constant dense<0.000000e+00> : vector<16xf32>
    %13 = vector.multi_reduction <add>, %12, %cst [1] : vector<16x64xf32> to vector<16xf32>
    %14 = vector.shape_cast %13 : vector<16xf32> to vector<16x1xf32>
    %cst_25 = arith.constant 6.400000e+01 : f32
    %15 = vector.broadcast %cst_25 : f32 to vector<16x1xf32>
    %16 = arith.divf %14, %15 : vector<16x1xf32>
    %cst_26 = arith.constant 9.99999997E-7 : f32
    %17 = vector.broadcast %cst_26 : f32 to vector<16x1xf32>
    %18 = arith.addf %16, %17 : vector<16x1xf32>
    %19 = math.rsqrt %18 : vector<16x1xf32>
    %20 = vector.broadcast %19 : vector<16x1xf32> to vector<16x64xf32>
    %21 = arith.mulf %0, %20 : vector<16x64xf32>
    %22 = vector.broadcast %11 : vector<1x64xf32> to vector<16x64xf32>
    %23 = arith.mulf %21, %22 : vector<16x64xf32>
    %24 = arith.truncf %23 : vector<16x64xf32> to vector<16x64xbf16>
    %25 = vector.extract_strided_slice %7 {offsets = [0, 0, 0], sizes = [1, 64, 192], strides = [1, 1, 1]} : vector<2x64x192xbf16> to vector<1x64x192xbf16>
    %26 = vector.shape_cast %25 : vector<1x64x192xbf16> to vector<64x192xbf16>
    %cst_27 = arith.constant dense<0.000000e+00> : vector<16x192xf32>
    %27 = tpu.matmul %24, %26, %cst_27 {dimension_numbers = #tpu.dot_dimension_numbers<[1], [0], [0], [1], [0, 0, 1, 1], [], []>} : vector<16x64xbf16>, vector<64x192xbf16>, vector<16x192xf32> -> vector<16x192xf32>
    %28 = vector.extract_strided_slice %6 {offsets = [0, 0], sizes = [1, 192], strides = [1, 1]} : vector<2x192xf32> to vector<1x192xf32>
    %29 = vector.broadcast %28 : vector<1x192xf32> to vector<16x192xf32>
    %30 = arith.addf %27, %29 : vector<16x192xf32>
    %31 = vector.extract_strided_slice %30 {offsets = [0, 0], sizes = [16, 64], strides = [1, 1]} : vector<16x192xf32> to vector<16x64xf32>
    %32 = arith.mulf %31, %2 : vector<16x64xf32>
    %33 = arith.truncf %31 : vector<16x64xf32> to vector<16x64xbf16>
    %cst_28 = arith.constant dense<0.000000e+00> : vector<16x64xf32>
    %34 = tpu.matmul %33, %4, %cst_28 {dimension_numbers = #tpu.dot_dimension_numbers<[1], [0], [0], [1], [0, 0, 1, 1], [], []>} : vector<16x64xbf16>, vector<64x64xbf16>, vector<16x64xf32> -> vector<16x64xf32>
    %35 = arith.mulf %34, %3 : vector<16x64xf32>
    %36 = arith.addf %32, %35 : vector<16x64xf32>
    %37 = vector.extract_strided_slice %30 {offsets = [0, 64], sizes = [16, 64], strides = [1, 1]} : vector<16x192xf32> to vector<16x64xf32>
    %38 = arith.mulf %37, %2 : vector<16x64xf32>
    %39 = arith.truncf %37 : vector<16x64xf32> to vector<16x64xbf16>
    %cst_29 = arith.constant dense<0.000000e+00> : vector<16x64xf32>
    %40 = tpu.matmul %39, %4, %cst_29 {dimension_numbers = #tpu.dot_dimension_numbers<[1], [0], [0], [1], [0, 0, 1, 1], [], []>} : vector<16x64xbf16>, vector<64x64xbf16>, vector<16x64xf32> -> vector<16x64xf32>
    %41 = arith.mulf %40, %3 : vector<16x64xf32>
    %42 = arith.addf %38, %41 : vector<16x64xf32>
    %43 = vector.extract_strided_slice %30 {offsets = [0, 128], sizes = [16, 64], strides = [1, 1]} : vector<16x192xf32> to vector<16x64xf32>
    %44 = vector.extract_strided_slice %36 {offsets = [0, 0], sizes = [16, 16], strides = [1, 1]} : vector<16x64xf32> to vector<16x16xf32>
    %45 = vector.extract_strided_slice %36 {offsets = [0, 16], sizes = [16, 16], strides = [1, 1]} : vector<16x64xf32> to vector<16x16xf32>
    %46 = vector.extract_strided_slice %36 {offsets = [0, 32], sizes = [16, 16], strides = [1, 1]} : vector<16x64xf32> to vector<16x16xf32>
    %47 = vector.extract_strided_slice %36 {offsets = [0, 48], sizes = [16, 16], strides = [1, 1]} : vector<16x64xf32> to vector<16x16xf32>
    %48 = vector.shape_cast %44 : vector<16x16xf32> to vector<1x16x16xf32>
    %49 = vector.shape_cast %45 : vector<16x16xf32> to vector<1x16x16xf32>
    %50 = vector.shape_cast %46 : vector<16x16xf32> to vector<1x16x16xf32>
    %51 = vector.shape_cast %47 : vector<16x16xf32> to vector<1x16x16xf32>
    %52 = tpu.concatenate %48, %49, %50, %51 in 0 : vector<1x16x16xf32>, vector<1x16x16xf32>, vector<1x16x16xf32>, vector<1x16x16xf32> -> vector<4x16x16xf32>
    %53 = arith.truncf %52 : vector<4x16x16xf32> to vector<4x16x16xbf16>
    %54 = vector.extract_strided_slice %42 {offsets = [0, 0], sizes = [16, 16], strides = [1, 1]} : vector<16x64xf32> to vector<16x16xf32>
    %55 = vector.extract_strided_slice %42 {offsets = [0, 16], sizes = [16, 16], strides = [1, 1]} : vector<16x64xf32> to vector<16x16xf32>
    %56 = vector.extract_strided_slice %42 {offsets = [0, 32], sizes = [16, 16], strides = [1, 1]} : vector<16x64xf32> to vector<16x16xf32>
    %57 = vector.extract_strided_slice %42 {offsets = [0, 48], sizes = [16, 16], strides = [1, 1]} : vector<16x64xf32> to vector<16x16xf32>
    %58 = vector.shape_cast %54 : vector<16x16xf32> to vector<1x16x16xf32>
    %59 = vector.shape_cast %55 : vector<16x16xf32> to vector<1x16x16xf32>
    %60 = vector.shape_cast %56 : vector<16x16xf32> to vector<1x16x16xf32>
    %61 = vector.shape_cast %57 : vector<16x16xf32> to vector<1x16x16xf32>
    %62 = tpu.concatenate %58, %59, %60, %61 in 0 : vector<1x16x16xf32>, vector<1x16x16xf32>, vector<1x16x16xf32>, vector<1x16x16xf32> -> vector<4x16x16xf32>
    %63 = arith.truncf %62 : vector<4x16x16xf32> to vector<4x16x16xbf16>
    %64 = vector.extract_strided_slice %43 {offsets = [0, 0], sizes = [16, 16], strides = [1, 1]} : vector<16x64xf32> to vector<16x16xf32>
    %65 = vector.extract_strided_slice %43 {offsets = [0, 16], sizes = [16, 16], strides = [1, 1]} : vector<16x64xf32> to vector<16x16xf32>
    %66 = vector.extract_strided_slice %43 {offsets = [0, 32], sizes = [16, 16], strides = [1, 1]} : vector<16x64xf32> to vector<16x16xf32>
    %67 = vector.extract_strided_slice %43 {offsets = [0, 48], sizes = [16, 16], strides = [1, 1]} : vector<16x64xf32> to vector<16x16xf32>
    %68 = vector.shape_cast %64 : vector<16x16xf32> to vector<1x16x16xf32>
    %69 = vector.shape_cast %65 : vector<16x16xf32> to vector<1x16x16xf32>
    %70 = vector.shape_cast %66 : vector<16x16xf32> to vector<1x16x16xf32>
    %71 = vector.shape_cast %67 : vector<16x16xf32> to vector<1x16x16xf32>
    %72 = tpu.concatenate %68, %69, %70, %71 in 0 : vector<1x16x16xf32>, vector<1x16x16xf32>, vector<1x16x16xf32>, vector<1x16x16xf32> -> vector<4x16x16xf32>
    %73 = arith.truncf %72 : vector<4x16x16xf32> to vector<4x16x16xbf16>
    %cst_30 = arith.constant dense<0.000000e+00> : vector<4x16x16xf32>
    %74 = tpu.matmul %53, %63, %cst_30 {dimension_numbers = #tpu.dot_dimension_numbers<[2], [2], [1], [1], [0, 0, 0, 1, 1, 1], [0], [0]>} : vector<4x16x16xbf16>, vector<4x16x16xbf16>, vector<4x16x16xf32> -> vector<4x16x16xf32>
    %75 = vector.shape_cast %1 : vector<16x16xf32> to vector<1x16x16xf32>
    %76 = vector.broadcast %75 : vector<1x16x16xf32> to vector<4x16x16xf32>
    %77 = arith.addf %74, %76 : vector<4x16x16xf32>
    %cst_31 = arith.constant dense<0xFF800000> : vector<4x16xf32>
    %78 = vector.multi_reduction <maximumf>, %77, %cst_31 [2] : vector<4x16x16xf32> to vector<4x16xf32>
    %79 = vector.shape_cast %78 : vector<4x16xf32> to vector<4x16x1xf32>
    %80 = vector.broadcast %79 : vector<4x16x1xf32> to vector<4x16x16xf32>
    %81 = arith.subf %77, %80 : vector<4x16x16xf32>
    %82 = math.exp %81 : vector<4x16x16xf32>
    %cst_32 = arith.constant dense<0.000000e+00> : vector<4x16xf32>
    %83 = vector.multi_reduction <add>, %82, %cst_32 [2] : vector<4x16x16xf32> to vector<4x16xf32>
    %84 = vector.shape_cast %83 : vector<4x16xf32> to vector<4x16x1xf32>
    %85 = tpu.reciprocal %84 {approx = true} : vector<4x16x1xf32> -> vector<4x16x1xf32>
    %86 = vector.broadcast %85 : vector<4x16x1xf32> to vector<4x16x16xf32>
    %87 = arith.mulf %82, %86 : vector<4x16x16xf32>
    %88 = arith.truncf %87 : vector<4x16x16xf32> to vector<4x16x16xbf16>
    %cst_33 = arith.constant dense<0.000000e+00> : vector<4x16x16xf32>
    %89 = tpu.matmul %88, %73, %cst_33 {dimension_numbers = #tpu.dot_dimension_numbers<[2], [1], [1], [2], [0, 0, 0, 1, 1, 2], [0], [0]>} : vector<4x16x16xbf16>, vector<4x16x16xbf16>, vector<4x16x16xf32> -> vector<4x16x16xf32>
    %90 = arith.truncf %89 : vector<4x16x16xf32> to vector<4x16x16xbf16>
    %91 = vector.extract_strided_slice %8 {offsets = [0, 0, 0], sizes = [4, 16, 64], strides = [1, 1, 1]} : vector<8x16x64xbf16> to vector<4x16x64xbf16>
    %cst_34 = arith.constant dense<0.000000e+00> : vector<4x16x64xf32>
    %92 = tpu.matmul %90, %91, %cst_34 {dimension_numbers = #tpu.dot_dimension_numbers<[2], [1], [1], [2], [0, 0, 0, 1, 1, 2], [0], [0]>} : vector<4x16x16xbf16>, vector<4x16x64xbf16>, vector<4x16x64xf32> -> vector<4x16x64xf32>
    %cst_35 = arith.constant dense<0.000000e+00> : vector<16x64xf32>
    %93 = vector.multi_reduction <add>, %92, %cst_35 [0] : vector<4x16x64xf32> to vector<16x64xf32>
    %94 = arith.addf %0, %93 : vector<16x64xf32>
    %95 = vector.extract_strided_slice %5 {offsets = [2, 0], sizes = [1, 64], strides = [1, 1]} : vector<5x64xf32> to vector<1x64xf32>
    %96 = arith.mulf %94, %94 : vector<16x64xf32>
    %cst_36 = arith.constant dense<0.000000e+00> : vector<16xf32>
    %97 = vector.multi_reduction <add>, %96, %cst_36 [1] : vector<16x64xf32> to vector<16xf32>
    %98 = vector.shape_cast %97 : vector<16xf32> to vector<16x1xf32>
    %cst_37 = arith.constant 6.400000e+01 : f32
    %99 = vector.broadcast %cst_37 : f32 to vector<16x1xf32>
    %100 = arith.divf %98, %99 : vector<16x1xf32>
    %cst_38 = arith.constant 9.99999997E-7 : f32
    %101 = vector.broadcast %cst_38 : f32 to vector<16x1xf32>
    %102 = arith.addf %100, %101 : vector<16x1xf32>
    %103 = math.rsqrt %102 : vector<16x1xf32>
    %104 = vector.broadcast %103 : vector<16x1xf32> to vector<16x64xf32>
    %105 = arith.mulf %94, %104 : vector<16x64xf32>
    %106 = vector.broadcast %95 : vector<1x64xf32> to vector<16x64xf32>
    %107 = arith.mulf %105, %106 : vector<16x64xf32>
    %108 = arith.truncf %107 : vector<16x64xf32> to vector<16x64xbf16>
    %109 = vector.extract_strided_slice %9 {offsets = [0, 0, 0], sizes = [1, 64, 256], strides = [1, 1, 1]} : vector<2x64x256xbf16> to vector<1x64x256xbf16>
    %110 = vector.shape_cast %109 : vector<1x64x256xbf16> to vector<64x256xbf16>
    %cst_39 = arith.constant dense<0.000000e+00> : vector<16x256xf32>
    %111 = tpu.matmul %108, %110, %cst_39 {dimension_numbers = #tpu.dot_dimension_numbers<[1], [0], [0], [1], [0, 0, 1, 1], [], []>} : vector<16x64xbf16>, vector<64x256xbf16>, vector<16x256xf32> -> vector<16x256xf32>
    %112 = vector.extract_strided_slice %111 {offsets = [0, 0], sizes = [16, 128], strides = [1, 1]} : vector<16x256xf32> to vector<16x128xf32>
    %113 = vector.extract_strided_slice %111 {offsets = [0, 128], sizes = [16, 128], strides = [1, 1]} : vector<16x256xf32> to vector<16x128xf32>
    %114 = arith.negf %112 : vector<16x128xf32>
    %115 = math.exp %114 : vector<16x128xf32>
    %cst_40 = arith.constant 1.000000e+00 : f32
    %116 = vector.broadcast %cst_40 : f32 to vector<16x128xf32>
    %117 = arith.addf %116, %115 : vector<16x128xf32>
    %118 = arith.divf %116, %117 : vector<16x128xf32>
    %119 = arith.mulf %112, %118 : vector<16x128xf32>
    %120 = arith.mulf %119, %113 : vector<16x128xf32>
    %121 = arith.truncf %120 : vector<16x128xf32> to vector<16x128xbf16>
    %122 = vector.extract_strided_slice %10 {offsets = [0, 0, 0], sizes = [1, 128, 64], strides = [1, 1, 1]} : vector<2x128x64xbf16> to vector<1x128x64xbf16>
    %123 = vector.shape_cast %122 : vector<1x128x64xbf16> to vector<128x64xbf16>
    %cst_41 = arith.constant dense<0.000000e+00> : vector<16x64xf32>
    %124 = tpu.matmul %121, %123, %cst_41 {dimension_numbers = #tpu.dot_dimension_numbers<[1], [0], [0], [1], [0, 0, 1, 1], [], []>} : vector<16x128xbf16>, vector<128x64xbf16>, vector<16x64xf32> -> vector<16x64xf32>
    %125 = arith.addf %94, %124 : vector<16x64xf32>
    %126 = vector.extract_strided_slice %5 {offsets = [1, 0], sizes = [1, 64], strides = [1, 1]} : vector<5x64xf32> to vector<1x64xf32>
    %127 = arith.mulf %125, %125 : vector<16x64xf32>
    %cst_42 = arith.constant dense<0.000000e+00> : vector<16xf32>
    %128 = vector.multi_reduction <add>, %127, %cst_42 [1] : vector<16x64xf32> to vector<16xf32>
    %129 = vector.shape_cast %128 : vector<16xf32> to vector<16x1xf32>
    %cst_43 = arith.constant 6.400000e+01 : f32
    %130 = vector.broadcast %cst_43 : f32 to vector<16x1xf32>
    %131 = arith.divf %129, %130 : vector<16x1xf32>
    %cst_44 = arith.constant 9.99999997E-7 : f32
    %132 = vector.broadcast %cst_44 : f32 to vector<16x1xf32>
    %133 = arith.addf %131, %132 : vector<16x1xf32>
    %134 = math.rsqrt %133 : vector<16x1xf32>
    %135 = vector.broadcast %134 : vector<16x1xf32> to vector<16x64xf32>
    %136 = arith.mulf %125, %135 : vector<16x64xf32>
    %137 = vector.broadcast %126 : vector<1x64xf32> to vector<16x64xf32>
    %138 = arith.mulf %136, %137 : vector<16x64xf32>
    %139 = arith.truncf %138 : vector<16x64xf32> to vector<16x64xbf16>
    %140 = vector.extract_strided_slice %7 {offsets = [1, 0, 0], sizes = [1, 64, 192], strides = [1, 1, 1]} : vector<2x64x192xbf16> to vector<1x64x192xbf16>
    %141 = vector.shape_cast %140 : vector<1x64x192xbf16> to vector<64x192xbf16>
    %cst_45 = arith.constant dense<0.000000e+00> : vector<16x192xf32>
    %142 = tpu.matmul %139, %141, %cst_45 {dimension_numbers = #tpu.dot_dimension_numbers<[1], [0], [0], [1], [0, 0, 1, 1], [], []>} : vector<16x64xbf16>, vector<64x192xbf16>, vector<16x192xf32> -> vector<16x192xf32>
    %143 = vector.extract_strided_slice %6 {offsets = [1, 0], sizes = [1, 192], strides = [1, 1]} : vector<2x192xf32> to vector<1x192xf32>
    %144 = vector.broadcast %143 : vector<1x192xf32> to vector<16x192xf32>
    %145 = arith.addf %142, %144 : vector<16x192xf32>
    %146 = vector.extract_strided_slice %145 {offsets = [0, 0], sizes = [16, 64], strides = [1, 1]} : vector<16x192xf32> to vector<16x64xf32>
    %147 = arith.mulf %146, %2 : vector<16x64xf32>
    %148 = arith.truncf %146 : vector<16x64xf32> to vector<16x64xbf16>
    %cst_46 = arith.constant dense<0.000000e+00> : vector<16x64xf32>
    %149 = tpu.matmul %148, %4, %cst_46 {dimension_numbers = #tpu.dot_dimension_numbers<[1], [0], [0], [1], [0, 0, 1, 1], [], []>} : vector<16x64xbf16>, vector<64x64xbf16>, vector<16x64xf32> -> vector<16x64xf32>
    %150 = arith.mulf %149, %3 : vector<16x64xf32>
    %151 = arith.addf %147, %150 : vector<16x64xf32>
    %152 = vector.extract_strided_slice %145 {offsets = [0, 64], sizes = [16, 64], strides = [1, 1]} : vector<16x192xf32> to vector<16x64xf32>
    %153 = arith.mulf %152, %2 : vector<16x64xf32>
    %154 = arith.truncf %152 : vector<16x64xf32> to vector<16x64xbf16>
    %cst_47 = arith.constant dense<0.000000e+00> : vector<16x64xf32>
    %155 = tpu.matmul %154, %4, %cst_47 {dimension_numbers = #tpu.dot_dimension_numbers<[1], [0], [0], [1], [0, 0, 1, 1], [], []>} : vector<16x64xbf16>, vector<64x64xbf16>, vector<16x64xf32> -> vector<16x64xf32>
    %156 = arith.mulf %155, %3 : vector<16x64xf32>
    %157 = arith.addf %153, %156 : vector<16x64xf32>
    %158 = vector.extract_strided_slice %145 {offsets = [0, 128], sizes = [16, 64], strides = [1, 1]} : vector<16x192xf32> to vector<16x64xf32>
    %159 = vector.extract_strided_slice %151 {offsets = [0, 0], sizes = [16, 16], strides = [1, 1]} : vector<16x64xf32> to vector<16x16xf32>
    %160 = vector.extract_strided_slice %151 {offsets = [0, 16], sizes = [16, 16], strides = [1, 1]} : vector<16x64xf32> to vector<16x16xf32>
    %161 = vector.extract_strided_slice %151 {offsets = [0, 32], sizes = [16, 16], strides = [1, 1]} : vector<16x64xf32> to vector<16x16xf32>
    %162 = vector.extract_strided_slice %151 {offsets = [0, 48], sizes = [16, 16], strides = [1, 1]} : vector<16x64xf32> to vector<16x16xf32>
    %163 = vector.shape_cast %159 : vector<16x16xf32> to vector<1x16x16xf32>
    %164 = vector.shape_cast %160 : vector<16x16xf32> to vector<1x16x16xf32>
    %165 = vector.shape_cast %161 : vector<16x16xf32> to vector<1x16x16xf32>
    %166 = vector.shape_cast %162 : vector<16x16xf32> to vector<1x16x16xf32>
    %167 = tpu.concatenate %163, %164, %165, %166 in 0 : vector<1x16x16xf32>, vector<1x16x16xf32>, vector<1x16x16xf32>, vector<1x16x16xf32> -> vector<4x16x16xf32>
    %168 = arith.truncf %167 : vector<4x16x16xf32> to vector<4x16x16xbf16>
    %169 = vector.extract_strided_slice %157 {offsets = [0, 0], sizes = [16, 16], strides = [1, 1]} : vector<16x64xf32> to vector<16x16xf32>
    %170 = vector.extract_strided_slice %157 {offsets = [0, 16], sizes = [16, 16], strides = [1, 1]} : vector<16x64xf32> to vector<16x16xf32>
    %171 = vector.extract_strided_slice %157 {offsets = [0, 32], sizes = [16, 16], strides = [1, 1]} : vector<16x64xf32> to vector<16x16xf32>
    %172 = vector.extract_strided_slice %157 {offsets = [0, 48], sizes = [16, 16], strides = [1, 1]} : vector<16x64xf32> to vector<16x16xf32>
    %173 = vector.shape_cast %169 : vector<16x16xf32> to vector<1x16x16xf32>
    %174 = vector.shape_cast %170 : vector<16x16xf32> to vector<1x16x16xf32>
    %175 = vector.shape_cast %171 : vector<16x16xf32> to vector<1x16x16xf32>
    %176 = vector.shape_cast %172 : vector<16x16xf32> to vector<1x16x16xf32>
    %177 = tpu.concatenate %173, %174, %175, %176 in 0 : vector<1x16x16xf32>, vector<1x16x16xf32>, vector<1x16x16xf32>, vector<1x16x16xf32> -> vector<4x16x16xf32>
    %178 = arith.truncf %177 : vector<4x16x16xf32> to vector<4x16x16xbf16>
    %179 = vector.extract_strided_slice %158 {offsets = [0, 0], sizes = [16, 16], strides = [1, 1]} : vector<16x64xf32> to vector<16x16xf32>
    %180 = vector.extract_strided_slice %158 {offsets = [0, 16], sizes = [16, 16], strides = [1, 1]} : vector<16x64xf32> to vector<16x16xf32>
    %181 = vector.extract_strided_slice %158 {offsets = [0, 32], sizes = [16, 16], strides = [1, 1]} : vector<16x64xf32> to vector<16x16xf32>
    %182 = vector.extract_strided_slice %158 {offsets = [0, 48], sizes = [16, 16], strides = [1, 1]} : vector<16x64xf32> to vector<16x16xf32>
    %183 = vector.shape_cast %179 : vector<16x16xf32> to vector<1x16x16xf32>
    %184 = vector.shape_cast %180 : vector<16x16xf32> to vector<1x16x16xf32>
    %185 = vector.shape_cast %181 : vector<16x16xf32> to vector<1x16x16xf32>
    %186 = vector.shape_cast %182 : vector<16x16xf32> to vector<1x16x16xf32>
    %187 = tpu.concatenate %183, %184, %185, %186 in 0 : vector<1x16x16xf32>, vector<1x16x16xf32>, vector<1x16x16xf32>, vector<1x16x16xf32> -> vector<4x16x16xf32>
    %188 = arith.truncf %187 : vector<4x16x16xf32> to vector<4x16x16xbf16>
    %cst_48 = arith.constant dense<0.000000e+00> : vector<4x16x16xf32>
    %189 = tpu.matmul %168, %178, %cst_48 {dimension_numbers = #tpu.dot_dimension_numbers<[2], [2], [1], [1], [0, 0, 0, 1, 1, 1], [0], [0]>} : vector<4x16x16xbf16>, vector<4x16x16xbf16>, vector<4x16x16xf32> -> vector<4x16x16xf32>
    %190 = vector.shape_cast %1 : vector<16x16xf32> to vector<1x16x16xf32>
    %191 = vector.broadcast %190 : vector<1x16x16xf32> to vector<4x16x16xf32>
    %192 = arith.addf %189, %191 : vector<4x16x16xf32>
    %cst_49 = arith.constant dense<0xFF800000> : vector<4x16xf32>
    %193 = vector.multi_reduction <maximumf>, %192, %cst_49 [2] : vector<4x16x16xf32> to vector<4x16xf32>
    %194 = vector.shape_cast %193 : vector<4x16xf32> to vector<4x16x1xf32>
    %195 = vector.broadcast %194 : vector<4x16x1xf32> to vector<4x16x16xf32>
    %196 = arith.subf %192, %195 : vector<4x16x16xf32>
    %197 = math.exp %196 : vector<4x16x16xf32>
    %cst_50 = arith.constant dense<0.000000e+00> : vector<4x16xf32>
    %198 = vector.multi_reduction <add>, %197, %cst_50 [2] : vector<4x16x16xf32> to vector<4x16xf32>
    %199 = vector.shape_cast %198 : vector<4x16xf32> to vector<4x16x1xf32>
    %200 = tpu.reciprocal %199 {approx = true} : vector<4x16x1xf32> -> vector<4x16x1xf32>
    %201 = vector.broadcast %200 : vector<4x16x1xf32> to vector<4x16x16xf32>
    %202 = arith.mulf %197, %201 : vector<4x16x16xf32>
    %203 = arith.truncf %202 : vector<4x16x16xf32> to vector<4x16x16xbf16>
    %cst_51 = arith.constant dense<0.000000e+00> : vector<4x16x16xf32>
    %204 = tpu.matmul %203, %188, %cst_51 {dimension_numbers = #tpu.dot_dimension_numbers<[2], [1], [1], [2], [0, 0, 0, 1, 1, 2], [0], [0]>} : vector<4x16x16xbf16>, vector<4x16x16xbf16>, vector<4x16x16xf32> -> vector<4x16x16xf32>
    %205 = arith.truncf %204 : vector<4x16x16xf32> to vector<4x16x16xbf16>
    %206 = vector.extract_strided_slice %8 {offsets = [4, 0, 0], sizes = [4, 16, 64], strides = [1, 1, 1]} : vector<8x16x64xbf16> to vector<4x16x64xbf16>
    %cst_52 = arith.constant dense<0.000000e+00> : vector<4x16x64xf32>
    %207 = tpu.matmul %205, %206, %cst_52 {dimension_numbers = #tpu.dot_dimension_numbers<[2], [1], [1], [2], [0, 0, 0, 1, 1, 2], [0], [0]>} : vector<4x16x16xbf16>, vector<4x16x64xbf16>, vector<4x16x64xf32> -> vector<4x16x64xf32>
    %cst_53 = arith.constant dense<0.000000e+00> : vector<16x64xf32>
    %208 = vector.multi_reduction <add>, %207, %cst_53 [0] : vector<4x16x64xf32> to vector<16x64xf32>
    %209 = arith.addf %125, %208 : vector<16x64xf32>
    %210 = vector.extract_strided_slice %5 {offsets = [3, 0], sizes = [1, 64], strides = [1, 1]} : vector<5x64xf32> to vector<1x64xf32>
    %211 = arith.mulf %209, %209 : vector<16x64xf32>
    %cst_54 = arith.constant dense<0.000000e+00> : vector<16xf32>
    %212 = vector.multi_reduction <add>, %211, %cst_54 [1] : vector<16x64xf32> to vector<16xf32>
    %213 = vector.shape_cast %212 : vector<16xf32> to vector<16x1xf32>
    %cst_55 = arith.constant 6.400000e+01 : f32
    %214 = vector.broadcast %cst_55 : f32 to vector<16x1xf32>
    %215 = arith.divf %213, %214 : vector<16x1xf32>
    %cst_56 = arith.constant 9.99999997E-7 : f32
    %216 = vector.broadcast %cst_56 : f32 to vector<16x1xf32>
    %217 = arith.addf %215, %216 : vector<16x1xf32>
    %218 = math.rsqrt %217 : vector<16x1xf32>
    %219 = vector.broadcast %218 : vector<16x1xf32> to vector<16x64xf32>
    %220 = arith.mulf %209, %219 : vector<16x64xf32>
    %221 = vector.broadcast %210 : vector<1x64xf32> to vector<16x64xf32>
    %222 = arith.mulf %220, %221 : vector<16x64xf32>
    %223 = arith.truncf %222 : vector<16x64xf32> to vector<16x64xbf16>
    %224 = vector.extract_strided_slice %9 {offsets = [1, 0, 0], sizes = [1, 64, 256], strides = [1, 1, 1]} : vector<2x64x256xbf16> to vector<1x64x256xbf16>
    %225 = vector.shape_cast %224 : vector<1x64x256xbf16> to vector<64x256xbf16>
    %cst_57 = arith.constant dense<0.000000e+00> : vector<16x256xf32>
    %226 = tpu.matmul %223, %225, %cst_57 {dimension_numbers = #tpu.dot_dimension_numbers<[1], [0], [0], [1], [0, 0, 1, 1], [], []>} : vector<16x64xbf16>, vector<64x256xbf16>, vector<16x256xf32> -> vector<16x256xf32>
    %227 = vector.extract_strided_slice %226 {offsets = [0, 0], sizes = [16, 128], strides = [1, 1]} : vector<16x256xf32> to vector<16x128xf32>
    %228 = vector.extract_strided_slice %226 {offsets = [0, 128], sizes = [16, 128], strides = [1, 1]} : vector<16x256xf32> to vector<16x128xf32>
    %229 = arith.negf %227 : vector<16x128xf32>
    %230 = math.exp %229 : vector<16x128xf32>
    %cst_58 = arith.constant 1.000000e+00 : f32
    %231 = vector.broadcast %cst_58 : f32 to vector<16x128xf32>
    %232 = arith.addf %231, %230 : vector<16x128xf32>
    %233 = arith.divf %231, %232 : vector<16x128xf32>
    %234 = arith.mulf %227, %233 : vector<16x128xf32>
    %235 = arith.mulf %234, %228 : vector<16x128xf32>
    %236 = arith.truncf %235 : vector<16x128xf32> to vector<16x128xbf16>
    %237 = vector.extract_strided_slice %10 {offsets = [1, 0, 0], sizes = [1, 128, 64], strides = [1, 1, 1]} : vector<2x128x64xbf16> to vector<1x128x64xbf16>
    %238 = vector.shape_cast %237 : vector<1x128x64xbf16> to vector<128x64xbf16>
    %cst_59 = arith.constant dense<0.000000e+00> : vector<16x64xf32>
    %239 = tpu.matmul %236, %238, %cst_59 {dimension_numbers = #tpu.dot_dimension_numbers<[1], [0], [0], [1], [0, 0, 1, 1], [], []>} : vector<16x128xbf16>, vector<128x64xbf16>, vector<16x64xf32> -> vector<16x64xf32>
    %240 = arith.addf %209, %239 : vector<16x64xf32>
    %241 = vector.extract_strided_slice %5 {offsets = [4, 0], sizes = [1, 64], strides = [1, 1]} : vector<5x64xf32> to vector<1x64xf32>
    %242 = arith.mulf %240, %240 : vector<16x64xf32>
    %cst_60 = arith.constant dense<0.000000e+00> : vector<16xf32>
    %243 = vector.multi_reduction <add>, %242, %cst_60 [1] : vector<16x64xf32> to vector<16xf32>
    %244 = vector.shape_cast %243 : vector<16xf32> to vector<16x1xf32>
    %cst_61 = arith.constant 6.400000e+01 : f32
    %245 = vector.broadcast %cst_61 : f32 to vector<16x1xf32>
    %246 = arith.divf %244, %245 : vector<16x1xf32>
    %cst_62 = arith.constant 9.99999997E-7 : f32
    %247 = vector.broadcast %cst_62 : f32 to vector<16x1xf32>
    %248 = arith.addf %246, %247 : vector<16x1xf32>
    %249 = math.rsqrt %248 : vector<16x1xf32>
    %250 = vector.broadcast %249 : vector<16x1xf32> to vector<16x64xf32>
    %251 = arith.mulf %240, %250 : vector<16x64xf32>
    %252 = vector.broadcast %241 : vector<1x64xf32> to vector<16x64xf32>
    %253 = arith.mulf %251, %252 : vector<16x64xf32>
    %c0_63 = arith.constant 0 : index
    %c0_64 = arith.constant 0 : index
    %254 = vector.load %arg12[%c0_63, %c0_64] : memref<16x64xf32, #tpu.memory_space<vmem>>, vector<16x64xf32>
    tpu.vector_store %arg12[%c0_63, %c0_64], %253 {strides = array<i32>} : memref<16x64xf32, #tpu.memory_space<vmem>>, vector<16x64xf32>,
    return
  }
  func.func @transform_0(%arg0: i32) -> (i32, i32) {
    %c0_i32 = arith.constant 0 : i32
    %c0_i32_0 = arith.constant 0 : i32
    %c0_i32_1 = arith.constant 0 : i32
    return %c0_i32, %c0_i32_0 : i32, i32
  }
  func.func @transform_1(%arg0: i32) -> (i32, i32) {
    %c0_i32 = arith.constant 0 : i32
    %c0_i32_0 = arith.constant 0 : i32
    %c0_i32_1 = arith.constant 0 : i32
    return %c0_i32, %c0_i32_0 : i32, i32
  }
  func.func @transform_2(%arg0: i32) -> (i32, i32) {
    %c0_i32 = arith.constant 0 : i32
    %c0_i32_0 = arith.constant 0 : i32
    %c0_i32_1 = arith.constant 0 : i32
    return %c0_i32, %c0_i32_0 : i32, i32
  }
  func.func @transform_3(%arg0: i32) -> (i32, i32) {
    %c0_i32 = arith.constant 0 : i32
    %c0_i32_0 = arith.constant 0 : i32
    %c0_i32_1 = arith.constant 0 : i32
    return %c0_i32, %c0_i32_0 : i32, i32
  }
  func.func @transform_4(%arg0: i32) -> (i32, i32) {
    %c0_i32 = arith.constant 0 : i32
    %c0_i32_0 = arith.constant 0 : i32
    %c0_i32_1 = arith.constant 0 : i32
    return %c0_i32, %c0_i32_0 : i32, i32
  }
  func.func @transform_5(%arg0: i32) -> (i32, i32) {
    %c0_i32 = arith.constant 0 : i32
    %c0_i32_0 = arith.constant 0 : i32
    %c0_i32_1 = arith.constant 0 : i32
    return %c0_i32, %c0_i32_0 : i32, i32
  }
  func.func @transform_6(%arg0: i32) -> (i32, i32, i32) {
    %c0_i32 = arith.constant 0 : i32
    %c0_i32_0 = arith.constant 0 : i32
    %c0_i32_1 = arith.constant 0 : i32
    %c0_i32_2 = arith.constant 0 : i32
    return %c0_i32, %c0_i32_0, %c0_i32_1 : i32, i32, i32
  }
  func.func @transform_7(%arg0: i32) -> (i32, i32) {
    %c0_i32 = arith.constant 0 : i32
    %c0_i32_0 = arith.constant 0 : i32
    %c0_i32_1 = arith.constant 0 : i32
    return %c0_i32, %c0_i32_0 : i32, i32
  }
  func.func @transform_8(%arg0: i32) -> (i32, i32, i32) {
    %c0_i32 = arith.constant 0 : i32
    %c0_i32_0 = arith.constant 0 : i32
    %c0_i32_1 = arith.constant 0 : i32
    %c0_i32_2 = arith.constant 0 : i32
    return %c0_i32, %c0_i32_0, %c0_i32_1 : i32, i32, i32
  }
  func.func @transform_9(%arg0: i32) -> (i32, i32, i32) {
    %c0_i32 = arith.constant 0 : i32
    %c0_i32_0 = arith.constant 0 : i32
    %c0_i32_1 = arith.constant 0 : i32
    %c0_i32_2 = arith.constant 0 : i32
    return %c0_i32, %c0_i32_0, %c0_i32_1 : i32, i32, i32
  }
  func.func @transform_10(%arg0: i32) -> (i32, i32, i32) {
    %c0_i32 = arith.constant 0 : i32
    %c0_i32_0 = arith.constant 0 : i32
    %c0_i32_1 = arith.constant 0 : i32
    %c0_i32_2 = arith.constant 0 : i32
    return %c0_i32, %c0_i32_0, %c0_i32_1 : i32, i32, i32
  }
  func.func @transform_11(%arg0: i32) -> (i32, i32) {
    %c0_i32 = arith.constant 0 : i32
    %c0_i32_0 = arith.constant 0 : i32
    %c0_i32_1 = arith.constant 0 : i32
    return %c0_i32, %c0_i32_0 : i32, i32
  }
}

</mosaic_0001>

<bundles_post_ra>
// kernel: le.8
= control target key start
LH: loop header
LB: loop body
LE: loop exit
PB: predicated region body
PF: predicated region fallthrough
CT: control target
= control target key end

     0   :  { %vm7_vm0 = vcmask 64512   ;;  %vm13_vm1 = vcmask 130112   ;;  %s39_s0 = inlined_call_operand.vmem [shape: s32[2,8], index: 0, kind: input, shape index: {}]   ;;  %s40_s1 = inlined_call_operand.vmem [shape: s32[16], index: 1, kind: output, shape index: {}]  }
   0x1   :  { %v4_v0 = vld [vmem:[%s39_s0] sm:$0x3]  ;;  %s22_s0 = smov 8  }
   0x2   :  { %5 = vst [vmem:[#allocation1] sm:$0x3] %v4_v0 }
   0x9   :  { %v10_v1 = vld [vmem:[#allocation1 + $0x1] sm:$0x1]   ;;  %v6_v2 = vld [vmem:[#allocation1] sm:$0x1]  }
   0xa   :  { %11 = vrot.lane.b32.xlu0 %v10_v1, %s22_s0  ;;  %8 = vst.msk [vmem:[#allocation0] sm:$0x1] %vm7_vm0, %v6_v2  }
  0x7c   :  { %v12_v3 = vpop.permute.xlu0 %11  }
  0x7d   :  { %14 = vst.msk [vmem:[#allocation0] sm:$0x1] %vm13_vm1, %v12_v3  }
  0x84   :  { %v17_v4 = vld [vmem:[#allocation0] sm:$0x1] }
  0x85   :  { %20 = vst [vmem:[%s40_s1] sm:$0x1] %v17_v4 }

// kernel: tile.27
= control target key start
LH: loop header
LB: loop body
LE: loop exit
PB: predicated region body
PF: predicated region fallthrough
CT: control target
= control target key end

     0   :  { %s154_s0 = inlined_call_operand.vmem [shape: f32[8,16], index: 0, kind: input, shape index: {}]   ;;  %s155_s1 = inlined_call_operand.vmem [shape: f32[2,8,4,16], index: 1, kind: output, shape index: {}]  }
   0x1   :  { %v4_v0 = vld [vmem:[%s154_s0] ss:$0 sm:$0xff]  ;;  %v51_v1 = vld [vmem:[%s154_s0 + $0x1] ss:$0 sm:$0xff]  ;;  %v54_v2 = vld [vmem:[%s154_s0 + $0x2] ss:$0 sm:$0xff] }
   0x2   :  { %5 = vst [vmem:[%s155_s1] sm:$0xf] %v4_v0  ;;  %v57_v3 = vld [vmem:[%s154_s0 + $0x3] ss:$0 sm:$0xff]  ;;  %v60_v4 = vld [vmem:[%s154_s0 + $0x4] ss:$0 sm:$0xff] }
   0x3   :  { %50 = vst [vmem:[%s155_s1 + $0x20] sm:$0xf] %v4_v0  ;;  %v63_v5 = vld [vmem:[%s154_s0 + $0x5] ss:$0 sm:$0xff]  ;;  %v66_v6 = vld [vmem:[%s154_s0 + $0x6] ss:$0 sm:$0xff] }
   0x4   :  { %52 = vst [vmem:[%s155_s1 + $0x4] sm:$0xf] %v51_v1  ;;  %v69_v7 = vld [vmem:[%s154_s0 + $0x7] ss:$0 sm:$0xff] }
   0x5   :  { %53 = vst [vmem:[%s155_s1 + $0x24] sm:$0xf] %v51_v1 }
   0x6   :  { %55 = vst [vmem:[%s155_s1 + $0x8] sm:$0xf] %v54_v2 }
   0x7   :  { %56 = vst [vmem:[%s155_s1 + $0x28] sm:$0xf] %v54_v2 }
   0x8   :  { %58 = vst [vmem:[%s155_s1 + $0xc] sm:$0xf] %v57_v3 }
   0x9   :  { %59 = vst [vmem:[%s155_s1 + $0x2c] sm:$0xf] %v57_v3 }
   0xa   :  { %61 = vst [vmem:[%s155_s1 + $0x10] sm:$0xf] %v60_v4 }
   0xb   :  { %62 = vst [vmem:[%s155_s1 + $0x30] sm:$0xf] %v60_v4 }
   0xc   :  { %64 = vst [vmem:[%s155_s1 + $0x14] sm:$0xf] %v63_v5 }
   0xd   :  { %65 = vst [vmem:[%s155_s1 + $0x34] sm:$0xf] %v63_v5 }
   0xe   :  { %67 = vst [vmem:[%s155_s1 + $0x18] sm:$0xf] %v66_v6 }
   0xf   :  { %68 = vst [vmem:[%s155_s1 + $0x38] sm:$0xf] %v66_v6 }
  0x10   :  { %70 = vst [vmem:[%s155_s1 + $0x1c] sm:$0xf] %v69_v7 }
  0x11   :  { %71 = vst [vmem:[%s155_s1 + $0x3c] sm:$0xf] %v69_v7 }

// kernel: tile.28
= control target key start
LH: loop header
LB: loop body
LE: loop exit
PB: predicated region body
PF: predicated region fallthrough
CT: control target
= control target key end

     0   :  { %vm68_vm0 = vcmask 1047556   ;;  %s167_s9 = smov 32   ;;  %s168_s10 = smov 16   ;;  %vm70_vm1 = vcmask 130048   ;;  %vm89_vm2 = vcmask 523648   ;;  %vm110_vm3 = vcmask 392448   ;;  %s259_s0 = inlined_call_operand.vmem [shape: f32[2,8,4,16], index: 0, kind: input, shape index: {}]   ;;  %s260_s1 = inlined_call_operand.vmem [shape: f32[16,64], index: 1, kind: output, shape index: {}]  }
   0x1   :  { %v152_v0 = vld [vmem:[%s259_s0 + $0x1c] sm:$0xf]  ;;  %v153_v1 = vld [vmem:[%s259_s0 + $0x18] sm:$0xf]  ;;  %v154_v2 = vld [vmem:[%s259_s0 + $0x14] sm:$0xf] }
   0x2   :  { %39 = vst [vmem:[#allocation0 + $0x38] sm:$0xf] %v152_v0  ;;  %v155_v3 = vld [vmem:[%s259_s0 + $0x10] sm:$0xf]  ;;  %v156_v4 = vld [vmem:[%s259_s0 + $0xc] sm:$0xf] }
   0x3   :  { %43 = vst [vmem:[#allocation0 + $0x30] sm:$0xf] %v153_v1  ;;  %v157_v5 = vld [vmem:[%s259_s0 + $0x8] sm:$0xf]  ;;  %v158_v6 = vld [vmem:[%s259_s0 + $0x4] sm:$0xf] }
   0x4   :  { %47 = vst [vmem:[#allocation0 + $0x28] sm:$0xf] %v154_v2  ;;  %v64_v7 = vld [vmem:[%s259_s0] sm:$0xf]  ;;  %v144_v8 = vld [vmem:[%s259_s0 + $0x3c] sm:$0xf] }
   0x5   :  { %51 = vst [vmem:[#allocation0 + $0x20] sm:$0xf] %v155_v3  ;;  %v145_v9 = vld [vmem:[%s259_s0 + $0x38] sm:$0xf]  ;;  %v146_v10 = vld [vmem:[%s259_s0 + $0x34] sm:$0xf] }
   0x6   :  { %55 = vst [vmem:[#allocation0 + $0x18] sm:$0xf] %v156_v4  ;;  %v147_v11 = vld [vmem:[%s259_s0 + $0x30] sm:$0xf]  ;;  %v148_v12 = vld [vmem:[%s259_s0 + $0x2c] sm:$0xf] }
   0x7   :  { %59 = vst [vmem:[#allocation0 + $0x10] sm:$0xf] %v157_v5  ;;  %v149_v13 = vld [vmem:[%s259_s0 + $0x28] sm:$0xf]  ;;  %v150_v15 = vld [vmem:[%s259_s0 + $0x24] sm:$0xf] }
   0x8   :  { %63 = vst [vmem:[#allocation0 + $0x8] sm:$0xf] %v158_v6  ;;  %v151_v17 = vld [vmem:[%s259_s0 + $0x20] sm:$0xf]  ;;  %s166_s0 = smov 48   ;;  %vm131_vm4 = vcmask 261248  }
   0x9   :  { %65 = vst [vmem:[#allocation0] sm:$0xf] %v64_v7 }
   0xa   :  { %7 = vst [vmem:[#allocation0 + $0x78] sm:$0xf] %v144_v8 }
   0xb   :  { %11 = vst [vmem:[#allocation0 + $0x70] sm:$0xf] %v145_v9 }
   0xc   :  { %v84_v14 = vld [vmem:[#allocation0 + $0x3] ss:$8 sm:$0xf0]   ;;  %15 = vst [vmem:[#allocation0 + $0x68] sm:$0xf] %v146_v10 }
   0xd   :  { %v105_v16 = vld [vmem:[#allocation0 + $0x2] ss:$8 sm:$0xf0]   ;;  %19 = vst [vmem:[#allocation0 + $0x60] sm:$0xf] %v147_v11 }
   0xe   :  { %23 = vst [vmem:[#allocation0 + $0x58] sm:$0xf] %v148_v12  ;;  %v126_v18 = vld [vmem:[#allocation0 + $0x1] ss:$8 sm:$0xf0]  }
   0xf   :  { %27 = vst [vmem:[#allocation0 + $0x50] sm:$0xf] %v149_v13  ;;  %v67_v35 = vld [vmem:[#allocation0] ss:$8 sm:$0xf0]  }
  0x10   :  { %v82_v19 = vld [vmem:[#allocation0 + $0x3] ss:$8 sm:$0xf]   ;;  %v103_v20 = vld [vmem:[#allocation0 + $0x2] ss:$8 sm:$0xf]  }
  0x11   :  { %v86_v21 = vsel %vm68_vm0, %v84_v14, %v82_v19  ;;  %v107_v22 = vsel %vm68_vm0, %v105_v16, %v103_v20  ;;  %v124_v23 = vld [vmem:[#allocation0 + $0x1] ss:$8 sm:$0xf]   ;;  %31 = vst [vmem:[#allocation0 + $0x48] sm:$0xf] %v150_v15 }
  0x12   :  { %87 = vrot.lane.b32.xlu0 %v86_v21, %s166_s0  ;;  %108 = vrot.lane.b32.xlu1 %v107_v22, %s167_s9  ;;  %v128_v24 = vsel %vm68_vm0, %v126_v18, %v124_v23  ;;  %35 = vst [vmem:[#allocation0 + $0x40] sm:$0xf] %v151_v17  ;;  %v66_v34 = vld [vmem:[#allocation0] ss:$8 sm:$0xf]  }
  0x13   :  { %129 = vrot.lane.b32.xlu2 %v128_v24, %s168_s10  ;;  %v69_v36 = vsel %vm68_vm0, %v67_v35, %v66_v34 }
  0x14   :  { %v94_v25 = vld [vmem:[#allocation0 + $0x43] ss:$8 sm:$0xf0]   ;;  %v115_v26 = vld [vmem:[#allocation0 + $0x42] ss:$8 sm:$0xf0]  }
  0x15   :  { %v136_v27 = vld [vmem:[#allocation0 + $0x41] ss:$8 sm:$0xf0]   ;;  %71 = vst.msk [vmem:[%s260_s1] sm:$0xff] %vm70_vm1, %v69_v36  }
  0x16   :  { %v75_v38 = vld [vmem:[#allocation0 + $0x40] ss:$8 sm:$0xf0]  }
  0x19   :  { %v92_v28 = vld [vmem:[#allocation0 + $0x43] ss:$8 sm:$0xf]   ;;  %v113_v29 = vld [vmem:[#allocation0 + $0x42] ss:$8 sm:$0xf]  }
  0x1a   :  { %v96_v30 = vsel %vm68_vm0, %v94_v25, %v92_v28  ;;  %v117_v31 = vsel %vm68_vm0, %v115_v26, %v113_v29  ;;  %v134_v32 = vld [vmem:[#allocation0 + $0x41] ss:$8 sm:$0xf]   ;;  %v73_v37 = vld [vmem:[#allocation0 + $0x40] ss:$8 sm:$0xf]  }
  0x1b   :  { %97 = vrot.lane.b32.xlu0 %v96_v30, %s166_s0  ;;  %118 = vrot.lane.b32.xlu1 %v117_v31, %s167_s9  ;;  %v138_v33 = vsel %vm68_vm0, %v136_v27, %v134_v32  ;;  %v77_v40 = vsel %vm68_vm0, %v75_v38, %v73_v37 }
  0x1c   :  { %139 = vrot.lane.b32.xlu2 %v138_v33, %s168_s10  ;;  %159 = vst.msk [vmem:[%s260_s1 + $0x8] sm:$0xff] %vm70_vm1, %v77_v40  }
  0x6d   :  { %v130_v39 = vpop.permute.xlu2 %129  }
  0x76   :  { %v140_v41 = vpop.permute.xlu2 %139  }
  0x84   :  { %v88_v42 = vpop.permute.xlu0 %87   ;;  %v109_v43 = vpop.permute.xlu1 %108  }
  0x85   :  { %90 = vst.msk [vmem:[%s260_s1] sm:$0xff] %vm89_vm2, %v88_v42  }
  0x86   :  { %111 = vst.msk [vmem:[%s260_s1] sm:$0xff] %vm110_vm3, %v109_v43  }
  0x87   :  { %132 = vst.msk [vmem:[%s260_s1] sm:$0xff] %vm131_vm4, %v130_v39  }
  0x8d   :  { %v98_v44 = vpop.permute.xlu0 %97   ;;  %v119_v45 = vpop.permute.xlu1 %118  }
  0x8e   :  { %160 = vst.msk [vmem:[%s260_s1 + $0x8] sm:$0xff] %vm89_vm2, %v98_v44  }
  0x8f   :  { %161 = vst.msk [vmem:[%s260_s1 + $0x8] sm:$0xff] %vm110_vm3, %v119_v45  }
  0x90   :  { %162 = vst.msk [vmem:[%s260_s1 + $0x8] sm:$0xff] %vm131_vm4, %v140_v41  }

// kernel: qwen2_encoder_forward.1
= control target key start
LH: loop header
LB: loop body
LE: loop exit
PB: predicated region body
PF: predicated region fallthrough
CT: control target
= control target key end

     0   :  { %vm140_vm0 = vcmask 523264   ;;  %s3452_s0 = inlined_call_operand.vmem [shape: f32[16,64], index: 0, kind: input, shape index: {}]   ;;  %s3453_s1 = inlined_call_operand.vmem [shape: f32[16,16], index: 1, kind: input, shape index: {}]   ;;  %s3454_s2 = inlined_call_operand.vmem [shape: f32[16,64], index: 2, kind: input, shape index: {}]   ;;  %s3455_s3 = inlined_call_operand.vmem [shape: f32[16,64], index: 3, kind: input, shape index: {}]   ;;  %s3456_s4 = inlined_call_operand.vmem [shape: bf16[64,64], index: 4, kind: input, shape index: {}]   ;;  %s3457_s5 = inlined_call_operand.vmem [shape: f32[5,64], index: 5, kind: input, shape index: {}]   ;;  %s3458_s6 = inlined_call_operand.vmem [shape: bf16[2,64,192], index: 6, kind: input, shape index: {}]   ;;  %s3459_s7 = inlined_call_operand.vmem [shape: f32[2,192], index: 7, kind: input, shape index: {}]   ;;  %s3460_s8 = inlined_call_operand.vmem [shape: bf16[8,16,64], index: 8, kind: input, shape index: {}]   ;;  %s3461_s9 = inlined_call_operand.vmem [shape: bf16[2,64,256], index: 9, kind: input, shape index: {}]   ;;  %s3462_s10 = inlined_call_operand.vmem [shape: bf16[2,128,64], index: 10, kind: input, shape index: {}]   ;;  %s3463_s11 = inlined_call_operand.hbm [shape: f32[16,64], index: 11, kind: output, shape index: {}]  }
   0x1   :  { %v2777_v0 = vld [vmem:[%s3452_s0] sm:$0xff] }
   0x2   :  { %16 = vsyncpa [#allocation3], 0  ;;  %v138_v1 = vmul.f32 %v2777_v0, %v2777_v0  ;;  %v2784_v2 = vld [vmem:[%s3452_s0 + $0x8] sm:$0xff]  ;;  %v2706_v6 = vmov 64.0   ;;  %v2153_v10 = vld [vmem:[%s3458_s6 + $0x30] sm:$0xf] }
   0x3   :  { %v139_v4 = vmul.f32 %v2784_v2, %v2784_v2  ;;  %2565 = vrcp.f32 %v2706_v6  ;;  %v2418_v11 = vld [vmem:[%s3458_s6 + $0x34] sm:$0xf0]  ;;  %v2417_v12 = vld [vmem:[%s3458_s6 + $0x34] sm:$0xf]  ;;  %v2155_v14 = vld [vmem:[%s3458_s6 + $0x38] sm:$0xf0] }
   0x4   :  { %v141_v3 = vsel %vm140_vm0, %v138_v1, 0.0  ;;  %v2154_v13 = vor.u32 %v2418_v11, %v2153_v10  ;;  %v2158_v15 = vor.u32 %v2417_v12, %v2155_v14  ;;  %v2145_v17 = vld [vmem:[%s3458_s6 + $0x20] sm:$0xf]  ;;  %v2416_v18 = vld [vmem:[%s3458_s6 + $0x24] sm:$0xf0]  ;;  %v2849_v41 = vld [vmem:[%s3456_s4 + $0x18] sm:$0xff] }
   0x5   :  { %142 = vadd.xlane.f32.xlu0 %v141_v3  ;;  %v144_v5 = vsel %vm140_vm0, %v139_v4, 0.0  ;;  %v2415_v19 = vld [vmem:[%s3458_s6 + $0x24] sm:$0xf]  ;;  %v2146_v20 = vor.u32 %v2416_v18, %v2145_v17  ;;  %v2147_v21 = vld [vmem:[%s3458_s6 + $0x28] sm:$0xf0]  ;;  %s2707_s17 = smov 64   ;;  %296 = vmatpush.bf16.msra.mxu3 %v2849_v41 }
   0x6   :  { %238 = vmatpush.bf16.msra.mxu0 %v2154_v13  ;;  %252 = vmatpush.bf16.msra.mxu1 %v2158_v15  ;;  %v2150_v22 = vor.u32 %v2415_v19, %v2147_v21  ;;  %v2137_v24 = vld [vmem:[%s3458_s6 + $0x10] sm:$0xf]  ;;  %v2414_v25 = vld [vmem:[%s3458_s6 + $0x14] sm:$0xf0]  ;;  %v2413_v26 = vld [vmem:[%s3458_s6 + $0x14] sm:$0xf] }
   0x7   :  { %v2138_v27 = vor.u32 %v2414_v25, %v2137_v24  ;;  %v2139_v28 = vld [vmem:[%s3458_s6 + $0x18] sm:$0xf0]  ;;  %v2129_v31 = vld [vmem:[%s3458_s6] sm:$0xf]  ;;  %v2412_v32 = vld [vmem:[%s3458_s6 + $0x4] sm:$0xf0] }
   0x8   :  { %v2142_v29 = vor.u32 %v2413_v26, %v2139_v28  ;;  %v2411_v33 = vld [vmem:[%s3458_s6 + $0x4] sm:$0xf]  ;;  %v2130_v34 = vor.u32 %v2412_v32, %v2129_v31  ;;  %v2131_v35 = vld [vmem:[%s3458_s6 + $0x8] sm:$0xf0]  ;;  %v2868_v4 = vld [vmem:[%s3456_s4 + $0x10] sm:$0xff]  ;;  %s2708_s14 = smov 80  }
   0x9   :  { %v2566_v7 = vpop.eup %2565  ;;  %v2134_v37 = vor.u32 %v2411_v33, %v2131_v35  ;;  %v2844_v40 = vld [vmem:[%s3454_s2 + $0x8] sm:$0xff]  ;;  %v2858_v57 = vld [vmem:[%s3457_s5] sm:$0x1f]  ;;  %297 = vmatpush.bf16.msra.mxu3 %v2868_v4  ;;  %s2709_s15 = smov 112   ;;  %s2710_s16 = smov 96   ;;  %vm448_vm8 = vcmask 130048  }
   0xa   :  { %v148_v8 = vmul.f32 64.0, %v2566_v7  ;;  %239 = vmatpush.bf16.msra.mxu0 %v2146_v20  ;;  %vm152_vm1 = vweird.f32 %v2566_v7  ;;  %253 = vmatpush.bf16.msra.mxu1 %v2150_v22  ;;  %v180_v60 = vperm.slane %v2858_v57, 0  ;;  %v2880_v6 = vld [vmem:[%s3456_s4] sm:$0xff]  ;;  %v47_v28 = vld [vmem:[%s3455_s3 + $0x8] sm:$0xff]  ;;  %s2713_s18 = smov 8  }
   0xb   :  { %314 = vrot.lane.b32.xlu2 %v2844_v40, %s2707_s17  ;;  %v44_v22 = vld [vmem:[%s3454_s2] sm:$0xff] }
   0xc   :  { %v149_v9 = vsub.f32 1.0, %v148_v8  ;;  %v46_v24 = vld [vmem:[%s3455_s3] sm:$0xff] }
   0xd   :  { %145 = vadd.xlane.f32.xlu0 %v144_v5  ;;  %v2874_v5 = vld [vmem:[%s3456_s4 + $0x8] sm:$0xff] }
   0xe   :  { %v150_v16 = vmul.f32 %v2566_v7, %v149_v9  ;;  %240 = vmatpush.bf16.msra.mxu0 %v2138_v27  ;;  %254 = vmatpush.bf16.msra.mxu1 %v2142_v29 }
   0xf   :  { %298 = vmatpush.bf16.msra.mxu3 %v2874_v5 }
  0x10   :  { %v151_v23 = vadd.f32 %v2566_v7, %v150_v16 }
  0x12   :  { %v2826_v30 = vsel %vm152_vm1, %v2566_v7, %v151_v23  ;;  %241 = vmatpush.bf16.msra.mxu0 %v2130_v34  ;;  %255 = vmatpush.bf16.msra.mxu1 %v2134_v37  ;;  %v57_v7 = vld [vmem:[%s3459_s7] sm:$0xf] }
  0x13   :  { %299 = vmatpush.bf16.msra.mxu3 %v2880_v6  ;;  %v185_v10 = vperm.slane %v57_v7, 0  ;;  %v186_v11 = vperm.slane %v57_v7, 2 }
  0x15   :  { %v189_v12 = vperm.slane %v185_v10, 0  ;;  %v190_v13 = vperm.slane %v186_v11, 0 }
  0x17   :  { %330 = vmatpush.bf16.msrb.mxu3 %v2849_v41 }
  0x1b   :  { %331 = vmatpush.bf16.msrb.mxu3 %v2868_v4 }
  0x1f   :  { %332 = vmatpush.bf16.msrb.mxu3 %v2874_v5 }
  0x23   :  { %333 = vmatpush.bf16.msrb.mxu3 %v2880_v6 }
  0x78   :  { %v143_v36 = vpop.xlane.xlu0 %142 }
  0x79   :  { %v154_v38 = vmul.f32 %v2826_v30, %v143_v36 }
  0x7b   :  { %v156_v39 = vadd.f32 1e-06, %v154_v38 }
  0x7d   :  { %2567 = vrsqrt.f32 %v156_v39  ;;  %vm164_vm3 = vweird.f32 %v156_v39 }
  0x80   :  { %v146_v42 = vpop.xlane.xlu0 %145 }
  0x81   :  { %v155_v43 = vmul.f32 %v2826_v30, %v146_v42 }
  0x83   :  { %v2568_v44 = vpop.eup %2567  ;;  %v157_v45 = vadd.f32 1e-06, %v155_v43 }
  0x84   :  { %v159_v46 = vmul.f32 %v2568_v44, %v156_v39  ;;  %vm165_vm2 = vweird.f32 %v2568_v44 }
  0x85   :  { %2569 = vrsqrt.f32 %v157_v45  ;;  %vm166_vm4 = vmor %vm164_vm3, %vm165_vm2  ;;  %vm174_vm6 = vweird.f32 %v157_v45 }
  0x86   :  { %v160_v47 = vmul.f32 %v2568_v44, %v159_v46 }
  0x88   :  { %v161_v48 = vmul.f32 0.5, %v160_v47 }
  0x8a   :  { %v162_v49 = vsub.f32 1.5, %v161_v48 }
  0x8b   :  { %v2570_v50 = vpop.eup %2569 }
  0x8c   :  { %v169_v51 = vmul.f32 %v2570_v50, %v157_v45  ;;  %v163_v52 = vmul.f32 %v2568_v44, %v162_v49  ;;  %vm175_vm5 = vweird.f32 %v2570_v50 }
  0x8d   :  { %vm176_vm7 = vmor %vm174_vm6, %vm175_vm5 }
  0x8e   :  { %v170_v53 = vmul.f32 %v2570_v50, %v169_v51  ;;  %v167_v55 = vsel %vm166_vm4, %v2568_v44, %v163_v52 }
  0x8f   :  { %v178_v59 = vmul.f32 %v167_v55, %v2777_v0 }
  0x90   :  { %v171_v54 = vmul.f32 0.5, %v170_v53 }
  0x91   :  { %v181_v63 = vmul.f32 %v180_v60, %v178_v59 }
  0x92   :  { %v172_v56 = vsub.f32 1.5, %v171_v54 }
  0x94   :  { %v173_v58 = vmul.f32 %v2570_v50, %v172_v56 }
  0x96   :  { %v177_v61 = vsel %vm176_vm7, %v2570_v50, %v173_v58 }
  0x97   :  { %v179_v62 = vmul.f32 %v177_v61, %v2784_v2 }
  0x99   :  { %v182_v1 = vmul.f32 %v180_v60, %v179_v62 }
  0x9b   :  { %v183_v3 = vpack.c.bf16 %v182_v1, %v181_v63 }
  0x9d   :  { %2159 = vmatmul.msk.bf16.vlgmr.msra.gmra.mxu0 %vm140_vm0, %v183_v3  ;;  %2160 = vmatmul.msk.bf16.vlgmr.msra.gmra.mxu1 %vm140_vm0, %v183_v3 }
 0x11a   :  { %v243_v8 = vpop.f32.mrf.mxu0  ;;  %v257_v9 = vpop.f32.mrf.mxu1 }
 0x11b   :  { %v244_v16 = vadd.f32 %v243_v8, %v189_v12  ;;  %v2892_v19 = vadd.f32 %v257_v9, %v190_v13 }
 0x11d   :  { %v262_v27 = vmul.f32 %v244_v16, %v44_v22 }
 0x122   :  { %v245_v14 = vpop.f32.mrf.mxu0  ;;  %v259_v15 = vpop.f32.mrf.mxu1 }
 0x123   :  { %v246_v17 = vadd.f32 %v245_v14, %v189_v12  ;;  %v2890_v18 = vadd.f32 %v259_v15, %v190_v13 }
 0x125   :  { %v264_v20 = vpack.c.bf16 %v246_v17, %v244_v16  ;;  %v2896_v21 = vpack.i.bf16 %v2890_v18, %v2892_v19  ;;  %v263_v32 = vmul.f32 %v246_v17, %v2844_v40  ;;  %v2922_v40 = vpop.permute.xlu2 %314 }
 0x126   :  { %v319_v49 = vmul.f32 %v2922_v40, %v246_v17 }
 0x127   :  { %321 = vrot.lane.b32.xlu1 %v264_v20, %s2707_s17  ;;  %2177 = vmatmul.msk.bf16.vlgmr.msra.gmra.mxu3 %vm140_vm0, %v264_v20 }
 0x12f   :  { %312 = vrot.lane.b32.xlu1 %v44_v22, %s2707_s17 }
 0x199   :  { %v322_v23 = vpop.permute.xlu1 %321 }
 0x19a   :  { %2178 = vmatmul.msk.bf16.vlgmr.msrb.gmra.mxu3 %vm140_vm0, %v322_v23 }
 0x1a1   :  { %v2924_v47 = vpop.permute.xlu1 %312 }
 0x1a2   :  { %v318_v50 = vmul.f32 %v2924_v47, %v244_v16 }
 0x1aa   :  { %v301_v25 = vpop.f32.mrf.mxu3 }
 0x1ab   :  { %v306_v26 = vmul.f32 %v301_v25, %v46_v24 }
 0x1ad   :  { %v308_v29 = vadd.f32 %v306_v26, %v262_v27  ;;  %v429_v27 = vpack.c.bf16 %v2890_v18, %v2890_v18 }
 0x1af   :  { %v372_v35 = vpack.c.bf16 %v308_v29, %v308_v29 }
 0x1b1   :  { %v2912_v38 = vunpack.c.l.b16 %v372_v35 }
 0x1b2   :  { %v303_v31 = vpop.f32.mrf.mxu3 }
 0x1b3   :  { %v307_v33 = vmul.f32 %v303_v31, %v47_v28 }
 0x1b5   :  { %v309_v34 = vadd.f32 %v307_v33, %v263_v32  ;;  %v669_v32 = vunpack.c.l.b16 %v429_v27 }
 0x1b7   :  { %v2490_v36 = vpack.i.bf16 %v309_v34, %v308_v29  ;;  %v373_v37 = vpack.c.bf16 %v309_v34, %v309_v34 }
 0x1b9   :  { %v2914_v39 = vunpack.c.l.b16 %v373_v37 }
 0x1bb   :  { %v440_v42 = vpack.c.b16 %v2914_v39, %v2912_v38 }
 0x21d   :  { %v335_v43 = vpop.f32.mrf.mxu3 }
 0x21e   :  { %v340_v44 = vmul.f32 %v335_v43, %v46_v24 }
 0x220   :  { %344 = vrot.lane.b32.xlu2 %v340_v44, %s2707_s17 }
 0x225   :  { %v337_v45 = vpop.f32.mrf.mxu3 }
 0x226   :  { %v341_v46 = vmul.f32 %v337_v45, %v47_v28  ;;  %v428_v28 = vpack.c.bf16 %v2892_v19, %v2892_v19 }
 0x228   :  { %346 = vrot.lane.b32.xlu0 %v341_v46, %s2707_s17  ;;  %v668_v33 = vunpack.c.l.b16 %v428_v28 }
 0x22a   :  { %v670_v37 = vpack.c.b16 %v669_v32, %v668_v33 }
 0x230   :  { %2496 = vrot.lane.b32.xlu0 %v2490_v36, %s2708_s14 }
 0x238   :  { %2501 = vrot.lane.b32.xlu0 %v2490_v36, %s2709_s15 }
 0x27a   :  { %v345_v48 = vpop.permute.xlu2 %344 }
 0x27b   :  { %v350_v52 = vadd.f32 %v345_v48, %v318_v50 }
 0x27d   :  { %v400_v56 = vpack.c.bf16 %v350_v52, %v350_v52 }
 0x27f   :  { %v443_v59 = vunpack.c.l.b16 %v400_v56 }
 0x29a   :  { %v347_v51 = vpop.permute.xlu0 %346 }
 0x29b   :  { %v351_v53 = vadd.f32 %v347_v51, %v319_v49 }
 0x29d   :  { %v2480_v54 = vpack.i.bf16 %v351_v53, %v350_v52  ;;  %v401_v55 = vpack.c.bf16 %v351_v53, %v351_v53 }
 0x29f   :  { %2481 = vrot.lane.b32.xlu2 %v2480_v54, %s2708_s14  ;;  %2476 = vrot.lane.b32.xlu1 %v2480_v54, %s2710_s16  ;;  %v444_v58 = vunpack.c.l.b16 %v401_v55 }
 0x2a1   :  { %v445_v60 = vpack.c.b16 %v444_v58, %v443_v59 }
 0x2a2   :  { %v2497_v43 = vpop.permute.xlu0 %2496 }
 0x2a3   :  { %v2499_v49 = vunpack.i.h.bf16 %v2497_v43  ;;  %v2498_v50 = vunpack.i.l.bf16 %v2497_v43 }
 0x2a5   :  { %v379_v53 = vpack.c.bf16 %v2499_v49, %v2499_v49 }
 0x2a7   :  { %2486 = vrot.lane.b32.xlu1 %v2480_v54, %s2709_s15  ;;  %v378_v54 = vpack.c.bf16 %v2498_v50, %v2498_v50 }
 0x2a9   :  { %v535_v58 = vunpack.c.l.b16 %v378_v54 }
 0x2aa   :  { %v2502_v56 = vpop.permute.xlu0 %2501 }
 0x2ab   :  { %v2504_v59 = vunpack.i.h.bf16 %v2502_v56 }
 0x2af   :  { %2491 = vrot.lane.b32.xlu1 %v2490_v36, %s2710_s16 }
 0x2b7   :  { %446 = vrot.lane.b32.xlu1 %v445_v60, %s2707_s17  ;;  %v2503_v60 = vunpack.i.l.bf16 %v2502_v56 }
 0x2f9   :  { %v2482_v61 = vpop.permute.xlu2 %2481 }
 0x2fa   :  { %v2484_v3 = vunpack.i.h.bf16 %v2482_v61  ;;  %v2483_v7 = vunpack.i.l.bf16 %v2482_v61 }
 0x2fc   :  { %v407_v12 = vpack.c.bf16 %v2484_v3, %v2484_v3  ;;  %v406_v13 = vpack.c.bf16 %v2483_v7, %v2483_v7 }
 0x2fe   :  { %v541_v16 = vunpack.c.l.b16 %v407_v12  ;;  %v540_v17 = vunpack.c.l.b16 %v406_v13 }
 0x300   :  { %v542_v25 = vpack.c.b16 %v541_v16, %v540_v17 }
 0x311   :  { %v2477_v62 = vpop.permute.xlu1 %2476 }
 0x312   :  { %v2479_v63 = vunpack.i.h.bf16 %v2477_v62  ;;  %v2478_v1 = vunpack.i.l.bf16 %v2477_v62  ;;  %v375_v62 = vpack.c.bf16 %v2504_v59, %v2504_v59 }
 0x314   :  { %v405_v8 = vpack.c.bf16 %v2479_v63, %v2479_v63  ;;  %v404_v9 = vpack.c.bf16 %v2478_v1, %v2478_v1  ;;  %v374_v63 = vpack.c.bf16 %v2503_v60, %v2503_v60  ;;  %v472_v7 = vunpack.c.l.b16 %v375_v62 }
 0x316   :  { %v509_v10 = vunpack.c.l.b16 %v405_v8  ;;  %v508_v11 = vunpack.c.l.b16 %v404_v9  ;;  %v471_v8 = vunpack.c.l.b16 %v374_v63 }
 0x318   :  { %v510_v14 = vpack.c.b16 %v509_v10, %v508_v11  ;;  %v473_v9 = vpack.c.b16 %v472_v7, %v471_v8  ;;  %v42_v10 = vld [vmem:[%s3453_s1] sm:$0xff] }
 0x319   :  { %v2487_v15 = vpop.permute.xlu1 %2486 }
 0x31a   :  { %511 = vrot.lane.b32.xlu2 %v510_v14, %s2707_s17  ;;  %v2489_v20 = vunpack.i.h.bf16 %v2487_v15  ;;  %v2488_v22 = vunpack.i.l.bf16 %v2487_v15 }
 0x31c   :  { %v403_v23 = vpack.c.bf16 %v2489_v20, %v2489_v20  ;;  %v402_v24 = vpack.c.bf16 %v2488_v22, %v2488_v22 }
 0x31e   :  { %v477_v29 = vunpack.c.l.b16 %v403_v23  ;;  %v476_v31 = vunpack.c.l.b16 %v402_v24 }
 0x320   :  { %v478_v34 = vpack.c.b16 %v477_v29, %v476_v31 }
 0x321   :  { %v2492_v26 = vpop.permute.xlu1 %2491 }
 0x322   :  { %543 = vrot.lane.b32.xlu2 %v542_v25, %s2707_s17  ;;  %v2494_v18 = vunpack.i.h.bf16 %v2492_v26  ;;  %v2493_v19 = vunpack.i.l.bf16 %v2492_v26  ;;  %v43_v25 = vld [vmem:[%s3453_s1 + $0x8] sm:$0xff] }
 0x324   :  { %v377_v44 = vpack.c.bf16 %v2494_v18, %v2494_v18  ;;  %v376_v45 = vpack.c.bf16 %v2493_v19, %v2493_v19 }
 0x326   :  { %v504_v51 = vunpack.c.l.b16 %v377_v44  ;;  %v503_v52 = vunpack.c.l.b16 %v376_v45 }
 0x328   :  { %v505_v55 = vpack.c.b16 %v504_v51, %v503_v52 }
 0x329   :  { %v447_v35 = vpop.permute.xlu1 %446 }
 0x32a   :  { %479 = vrot.lane.b32.xlu2 %v478_v34, %s2707_s17  ;;  %v453_v36 = vsel %vm448_vm8, %v447_v35, 0 }
 0x32b   :  { %462 = vmatpush.bf16.xpose.msrb.mxu0 %v453_v36 }
 0x332   :  { %2179 = vmatmul.msk.bf16.vlgmr.msrb.gmra.mxu0 %vm448_vm8, %v440_v42  ;;  %v536_v42 = vunpack.c.l.b16 %v379_v53 }
 0x333   :  { %682 = vmatpush.bf16.msra.mxu0 %v670_v37 }
 0x334   :  { %v537_v61 = vpack.c.b16 %v536_v42, %v535_v58 }
 0x374   :  { %v512_v46 = vpop.permute.xlu2 %511 }
 0x375   :  { %v517_v48 = vsel %vm448_vm8, %v512_v46, 0 }
 0x376   :  { %526 = vmatpush.bf16.xpose.msra.mxu2 %v517_v48 }
 0x37c   :  { %v544_v38 = vpop.permute.xlu2 %543 }
 0x37d   :  { %v549_v39 = vsel %vm448_vm8, %v544_v38, 0  ;;  %2181 = vmatmul.msk.bf16.vlgmr.msra.gmra.mxu2 %vm448_vm8, %v505_v55 }
 0x37e   :  { %558 = vmatpush.bf16.xpose.msra.mxu3 %v549_v39 }
 0x384   :  { %v480_v1 = vpop.permute.xlu2 %479 }
 0x385   :  { %2182 = vmatmul.msk.bf16.vlgmr.msra.gmra.mxu3 %vm448_vm8, %v537_v61  ;;  %v485_v3 = vsel %vm448_vm8, %v480_v1, 0 }
 0x386   :  { %494 = vmatpush.bf16.xpose.msrb.mxu1 %v485_v3 }
 0x38d   :  { %2180 = vmatmul.msk.bf16.vlgmr.msrb.gmra.mxu1 %vm448_vm8, %v473_v9 }
 0x3af   :  { %v464_v13 = vpop.f32.mrf.mxu0 }
 0x3b0   :  { %v465_v15 = vadd.f32 %v464_v13, %v42_v10 }
 0x3b2   :  { %v565_v24 = vsel %vm448_vm8, %v465_v15, -inf }
 0x3b7   :  { %v466_v26 = vpop.f32.mrf.mxu0 }
 0x3b8   :  { %v467_v29 = vadd.f32 %v466_v26, %v43_v25 }
 0x3ba   :  { %v568_v34 = vsel %vm448_vm8, %v467_v29, -inf }
 0x400   :  { %v528_v11 = vpop.f32.mrf.mxu2 }
 0x401   :  { %v529_v12 = vadd.f32 %v528_v11, %v42_v10 }
 0x403   :  { %v577_v14 = vsel %vm448_vm8, %v529_v12, -inf }
 0x404   :  { %578 = vmax.xlane.f32.xlu1 %v577_v14 }
 0x408   :  { %v560_v16 = vpop.f32.mrf.mxu3  ;;  %v530_v28 = vpop.f32.mrf.mxu2 }
 0x409   :  { %v561_v17 = vadd.f32 %v560_v16, %v42_v10  ;;  %v531_v31 = vadd.f32 %v530_v28, %v43_v25 }
 0x40a   :  { %v496_v20 = vpop.f32.mrf.mxu1 }
 0x40b   :  { %v2955_v22 = vadd.f32 %v496_v20, %v42_v10  ;;  %v583_v23 = vsel %vm448_vm8, %v561_v17, -inf  ;;  %v580_v35 = vsel %vm448_vm8, %v531_v31, -inf }
 0x40c   :  { %584 = vmax.xlane.f32.xlu0 %v583_v23  ;;  %566 = vmax.xlane.f32.xlu1 %v565_v24 }
 0x40d   :  { %v571_v27 = vsel %vm448_vm8, %v2955_v22, -inf }
 0x40e   :  { %572 = vmax.xlane.f32.xlu2 %v571_v27 }
 0x410   :  { %v562_v37 = vpop.f32.mrf.mxu3 }
 0x411   :  { %v563_v18 = vadd.f32 %v562_v37, %v43_v25 }
 0x412   :  { %v498_v32 = vpop.f32.mrf.mxu1 }
 0x413   :  { %v2964_v33 = vadd.f32 %v498_v32, %v43_v25  ;;  %v586_v19 = vsel %vm448_vm8, %v563_v18, -inf }
 0x414   :  { %569 = vmax.xlane.f32.xlu0 %v568_v34 }
 0x415   :  { %v574_v36 = vsel %vm448_vm8, %v2964_v33, -inf }
 0x416   :  { %581 = vmax.xlane.f32.xlu2 %v580_v35  ;;  %575 = vmax.xlane.f32.xlu1 %v574_v36 }
 0x41e   :  { %587 = vmax.xlane.f32.xlu2 %v586_v19 }
 0x477   :  { %v579_v43 = vpop.xlane.xlu1 %578 }
 0x478   :  { %v593_v44 = vsub.f32 %v529_v12, %v579_v43 }
 0x47a   :  { %v605_v45 = vmul.f32 1.442695, %v593_v44 }
 0x47c   :  { %2571 = vpow2.f32 %v605_v45 }
 0x47f   :  { %v585_v46 = vpop.xlane.xlu0 %584  ;;  %v567_v48 = vpop.xlane.xlu1 %566 }
 0x480   :  { %v595_v49 = vsub.f32 %v561_v17, %v585_v46  ;;  %v589_v50 = vsub.f32 %v465_v15, %v567_v48 }
 0x481   :  { %v573_v51 = vpop.xlane.xlu2 %572 }
 0x482   :  { %v2971_v52 = vpop.eup %2571  ;;  %v609_v53 = vmul.f32 1.442695, %v595_v49  ;;  %v597_v54 = vmul.f32 1.442695, %v589_v50  ;;  %v591_v10 = vsub.f32 %v2955_v22, %v573_v51 }
 0x483   :  { %v625_v55 = vsel %vm448_vm8, %v2971_v52, 0.0 }
 0x484   :  { %2573 = vpow2.f32 %v609_v53  ;;  %626 = vadd.xlane.f32.xlu0 %v625_v55  ;;  %v601_v13 = vmul.f32 1.442695, %v591_v10 }
 0x485   :  { %2575 = vpow2.f32 %v597_v54 }
 0x487   :  { %v570_v56 = vpop.xlane.xlu0 %569 }
 0x488   :  { %v590_v38 = vsub.f32 %v467_v29, %v570_v56 }
 0x489   :  { %v582_v39 = vpop.xlane.xlu2 %581  ;;  %v576_v20 = vpop.xlane.xlu1 %575 }
 0x48a   :  { %v2975_v42 = vpop.eup %2573  ;;  %v599_v58 = vmul.f32 1.442695, %v590_v38  ;;  %v594_v59 = vsub.f32 %v531_v31, %v582_v39  ;;  %v592_v22 = vsub.f32 %v2964_v33, %v576_v20 }
 0x48b   :  { %v2576_v60 = vpop.eup %2575  ;;  %v631_v61 = vsel %vm448_vm8, %v2975_v42, 0.0 }
 0x48c   :  { %2577 = vpow2.f32 %v599_v58  ;;  %v607_v62 = vmul.f32 1.442695, %v594_v59  ;;  %632 = vadd.xlane.f32.xlu1 %v631_v61  ;;  %v613_v63 = vsel %vm448_vm8, %v2576_v60, 0.0  ;;  %v603_v23 = vmul.f32 1.442695, %v592_v22 }
 0x48d   :  { %614 = vadd.xlane.f32.xlu0 %v613_v63 }
 0x48e   :  { %2579 = vpow2.f32 %v607_v62 }
 0x491   :  { %v588_v1 = vpop.xlane.xlu2 %587 }
 0x492   :  { %v2578_v3 = vpop.eup %2577  ;;  %v596_v7 = vsub.f32 %v563_v18, %v588_v1 }
 0x493   :  { %v616_v8 = vsel %vm448_vm8, %v2578_v3, 0.0 }
 0x494   :  { %v2580_v9 = vpop.eup %2579  ;;  %v611_v11 = vmul.f32 1.442695, %v596_v7 }
 0x495   :  { %617 = vadd.xlane.f32.xlu0 %v616_v8  ;;  %v628_v12 = vsel %vm448_vm8, %v2580_v9, 0.0 }
 0x496   :  { %2581 = vpow2.f32 %v611_v11  ;;  %629 = vadd.xlane.f32.xlu2 %v628_v12 }
 0x497   :  { %2583 = vpow2.f32 %v601_v13 }
 0x498   :  { %2585 = vpow2.f32 %v603_v23 }
 0x49c   :  { %v2582_v14 = vpop.eup %2581 }
 0x49d   :  { %v634_v15 = vsel %vm448_vm8, %v2582_v14, 0.0  ;;  %v2984_v16 = vpop.eup %2583 }
 0x49e   :  { %635 = vadd.xlane.f32.xlu0 %v634_v15  ;;  %v619_v17 = vsel %vm448_vm8, %v2984_v16, 0.0  ;;  %v2995_v24 = vpop.eup %2585 }
 0x49f   :  { %v622_v25 = vsel %vm448_vm8, %v2995_v24, 0.0 }
 0x4a5   :  { %2511 = vrot.lane.b32.xlu1 %v2896_v21, %s2708_s14 }
 0x4a6   :  { %620 = vadd.xlane.f32.xlu0 %v619_v17 }
 0x4ad   :  { %2516 = vrot.lane.b32.xlu1 %v2896_v21, %s2709_s15 }
 0x4ae   :  { %2506 = vrot.lane.b32.xlu2 %v2896_v21, %s2710_s16 }
 0x4d7   :  { %623 = vadd.xlane.f32.xlu2 %v622_v25 }
 0x4f7   :  { %v627_v26 = vpop.xlane.xlu0 %626 }
 0x4ff   :  { %v633_v21 = vpop.xlane.xlu1 %632 }
 0x500   :  { %v615_v27 = vpop.xlane.xlu0 %614 }
 0x501   :  { %2587 = vrcp.f32 %v615_v27 }
 0x502   :  { %2589 = vrcp.f32 %v627_v26 }
 0x507   :  { %v2588_v29 = vpop.eup %2587 }
 0x508   :  { %v618_v28 = vpop.xlane.xlu0 %617  ;;  %v645_v32 = vmul.f32 %v2588_v29, %v2576_v60  ;;  %v2590_v33 = vpop.eup %2589 }
 0x509   :  { %2591 = vrcp.f32 %v618_v28  ;;  %v630_v31 = vpop.xlane.xlu2 %629  ;;  %v649_v18 = vmul.f32 %v2590_v33, %v2971_v52 }
 0x50a   :  { %2593 = vrcp.f32 %v630_v31  ;;  %v653_v36 = vpack.c.bf16 %v645_v32, %v645_v32 }
 0x50b   :  { %2595 = vrcp.f32 %v633_v21  ;;  %v657_v56 = vpack.c.bf16 %v649_v18, %v649_v18 }
 0x50c   :  { %v663_v51 = vunpack.c.l.b16 %v653_v36 }
 0x50f   :  { %v2592_v34 = vpop.eup %2591 }
 0x510   :  { %v2594_v35 = vpop.eup %2593  ;;  %v646_v37 = vmul.f32 %v2592_v34, %v2578_v3  ;;  %v719_v3 = vunpack.c.l.b16 %v657_v56 }
 0x511   :  { %v650_v19 = vmul.f32 %v2594_v35, %v2580_v9  ;;  %v2507_v43 = vpop.permute.xlu2 %2506  ;;  %v636_v44 = vpop.xlane.xlu0 %635 }
 0x512   :  { %v654_v45 = vpack.c.bf16 %v646_v37, %v646_v37  ;;  %v2509_v46 = vunpack.i.h.bf16 %v2507_v43  ;;  %v2508_v48 = vunpack.i.l.bf16 %v2507_v43  ;;  %2597 = vrcp.f32 %v636_v44  ;;  %v2596_v50 = vpop.eup %2595 }
 0x513   :  { %v658_v49 = vpack.c.bf16 %v650_v19, %v650_v19  ;;  %v651_v59 = vmul.f32 %v2596_v50, %v2975_v42 }
 0x514   :  { %v664_v53 = vunpack.c.l.b16 %v654_v45  ;;  %v433_v54 = vpack.c.bf16 %v2509_v46, %v2509_v46  ;;  %v432_v55 = vpack.c.bf16 %v2508_v48, %v2508_v48  ;;  %v2427_v45 = vld [vmem:[%s3460_s8] sm:$0xff]  ;;  %v2429_v46 = vld [vmem:[%s3460_s8 + $0x10] sm:$0xff] }
 0x515   :  { %v720_v52 = vunpack.c.l.b16 %v658_v49  ;;  %v659_v10 = vpack.c.bf16 %v651_v59, %v651_v59  ;;  %802 = vmatpush.bf16.msrb.mxu0 %v2427_v45 }
 0x516   :  { %v665_v38 = vpack.c.b16 %v664_v53, %v663_v51  ;;  %v725_v39 = vunpack.c.l.b16 %v433_v54  ;;  %v724_v58 = vunpack.c.l.b16 %v432_v55 }
 0x517   :  { %v2512_v60 = vpop.permute.xlu1 %2511  ;;  %v721_v12 = vpack.c.b16 %v720_v52, %v719_v3  ;;  %v747_v20 = vunpack.c.l.b16 %v659_v10 }
 0x518   :  { %v2598_v61 = vpop.eup %2597  ;;  %2183 = vmatmul.msk.bf16.vlgmr.msra.gmra.mxu0 %vm448_vm8, %v665_v38  ;;  %v2514_v62 = vunpack.i.h.bf16 %v2512_v60  ;;  %v2513_v63 = vunpack.i.l.bf16 %v2512_v60  ;;  %v726_v1 = vpack.c.b16 %v725_v39, %v724_v58 }
 0x519   :  { %v652_v7 = vmul.f32 %v2598_v61, %v2582_v14  ;;  %v621_v21 = vpop.xlane.xlu0 %620 }
 0x51a   :  { %v435_v8 = vpack.c.bf16 %v2514_v62, %v2514_v62  ;;  %v434_v9 = vpack.c.bf16 %v2513_v63, %v2513_v63  ;;  %738 = vmatpush.bf16.msrb.mxu2 %v726_v1  ;;  %2599 = vrcp.f32 %v621_v21 }
 0x51b   :  { %v660_v11 = vpack.c.bf16 %v652_v7, %v652_v7 }
 0x51c   :  { %v753_v13 = vunpack.c.l.b16 %v435_v8  ;;  %v752_v15 = vunpack.c.l.b16 %v434_v9  ;;  %v2428_v8 = vld [vmem:[%s3460_s8 + $0x8] sm:$0xff] }
 0x51d   :  { %v748_v17 = vunpack.c.l.b16 %v660_v11  ;;  %2185 = vmatmul.msk.bf16.vlgmr.msrb.gmra.mxu2 %vm448_vm8, %v721_v12 }
 0x51e   :  { %v754_v42 = vpack.c.b16 %v753_v13, %v752_v15  ;;  %858 = vmatpush.bf16.msra.mxu2 %v2429_v46 }
 0x51f   :  { %v2517_v22 = vpop.permute.xlu1 %2516  ;;  %v749_v26 = vpack.c.b16 %v748_v17, %v747_v20 }
 0x520   :  { %v2519_v23 = vunpack.i.h.bf16 %v2517_v22  ;;  %v2518_v25 = vunpack.i.l.bf16 %v2517_v22  ;;  %766 = vmatpush.bf16.msrb.mxu3 %v754_v42  ;;  %v2600_v33 = vpop.eup %2599 }
 0x521   :  { %v647_v34 = vmul.f32 %v2600_v33, %v2984_v16  ;;  %v2430_v16 = vld [vmem:[%s3460_s8 + $0x18] sm:$0xff] }
 0x522   :  { %v431_v27 = vpack.c.bf16 %v2519_v23, %v2519_v23  ;;  %v430_v14 = vpack.c.bf16 %v2518_v25, %v2518_v25 }
 0x523   :  { %2186 = vmatmul.msk.bf16.vlgmr.msrb.gmra.mxu3 %vm448_vm8, %v749_v26  ;;  %v655_v36 = vpack.c.bf16 %v647_v34, %v647_v34 }
 0x524   :  { %v697_v28 = vunpack.c.l.b16 %v431_v27  ;;  %v696_v29 = vunpack.c.l.b16 %v430_v14  ;;  %886 = vmatpush.bf16.msra.mxu3 %v2430_v16 }
 0x525   :  { %v691_v19 = vunpack.c.l.b16 %v655_v36 }
 0x526   :  { %v698_v31 = vpack.c.b16 %v697_v28, %v696_v29 }
 0x528   :  { %710 = vmatpush.bf16.msra.mxu1 %v698_v31 }
 0x52c   :  { %830 = vmatpush.bf16.msrb.mxu1 %v2428_v8  ;;  %v2436_v8 = vld [vmem:[%s3461_s9 + $0x4] sm:$0xf0] }
 0x54a   :  { %v624_v32 = vpop.xlane.xlu2 %623 }
 0x54b   :  { %2601 = vrcp.f32 %v624_v32 }
 0x551   :  { %v2602_v35 = vpop.eup %2601 }
 0x552   :  { %v648_v37 = vmul.f32 %v2602_v35, %v2995_v24 }
 0x554   :  { %v656_v18 = vpack.c.bf16 %v648_v37, %v648_v37 }
 0x556   :  { %v692_v43 = vunpack.c.l.b16 %v656_v18 }
 0x558   :  { %v693_v44 = vpack.c.b16 %v692_v43, %v691_v19 }
 0x55a   :  { %2184 = vmatmul.msk.bf16.vlgmr.msra.gmra.mxu1 %vm448_vm8, %v693_v44 }
 0x595   :  { %v684_v24 = vpop.f32.mrf.mxu0 }
 0x596   :  { %v773_v48 = vpack.c.bf16 %v684_v24, %v684_v24 }
 0x598   :  { %v783_v51 = vunpack.c.l.b16 %v773_v48 }
 0x59d   :  { %v686_v49 = vpop.f32.mrf.mxu0 }
 0x59e   :  { %v774_v50 = vpack.c.bf16 %v686_v49, %v686_v49  ;;  %v2233_v49 = vld [vmem:[%s3461_s9 + $0x30] sm:$0xf] }
 0x5a0   :  { %v784_v53 = vunpack.c.l.b16 %v774_v50  ;;  %v740_v54 = vpop.f32.mrf.mxu2  ;;  %v2442_v50 = vld [vmem:[%s3461_s9 + $0x34] sm:$0xf0] }
 0x5a1   :  { %v777_v38 = vpack.c.bf16 %v740_v54, %v740_v54 }
 0x5a2   :  { %v785_v55 = vpack.c.b16 %v784_v53, %v783_v51  ;;  %v2441_v51 = vld [vmem:[%s3461_s9 + $0x34] sm:$0xf]  ;;  %v2235_v53 = vld [vmem:[%s3461_s9 + $0x38] sm:$0xf0] }
 0x5a3   :  { %v839_v59 = vunpack.c.l.b16 %v777_v38  ;;  %v2238_v54 = vor.u32 %v2441_v51, %v2235_v53  ;;  %v2439_v38 = vld [vmem:[%s3461_s9 + $0x24] sm:$0xf] }
 0x5a4   :  { %2191 = vmatmul.msk.bf16.vlgmr.msrb.gmra.mxu0 %vm448_vm8, %v785_v55  ;;  %v2225_v55 = vld [vmem:[%s3461_s9 + $0x20] sm:$0xf] }
 0x5a5   :  { %1008 = vmatpush.bf16.msra.mxu1 %v2238_v54 }
 0x5a6   :  { %v768_v56 = vpop.f32.mrf.mxu3 }
 0x5a7   :  { %v779_v60 = vpack.c.bf16 %v768_v56, %v768_v56  ;;  %v2440_v56 = vld [vmem:[%s3461_s9 + $0x24] sm:$0xf0] }
 0x5a8   :  { %v742_v39 = vpop.f32.mrf.mxu2 }
 0x5a9   :  { %v778_v58 = vpack.c.bf16 %v742_v39, %v742_v39  ;;  %v867_v1 = vunpack.c.l.b16 %v779_v60  ;;  %v2226_v39 = vor.u32 %v2440_v56, %v2225_v55  ;;  %v2438_v60 = vld [vmem:[%s3461_s9 + $0x14] sm:$0xf0] }
 0x5ab   :  { %v840_v52 = vunpack.c.l.b16 %v778_v58  ;;  %v2227_v58 = vld [vmem:[%s3461_s9 + $0x28] sm:$0xf0] }
 0x5ad   :  { %v841_v61 = vpack.c.b16 %v840_v52, %v839_v59  ;;  %v2230_v59 = vor.u32 %v2439_v38, %v2227_v58  ;;  %v2217_v52 = vld [vmem:[%s3461_s9 + $0x10] sm:$0xf] }
 0x5ae   :  { %v770_v62 = vpop.f32.mrf.mxu3 }
 0x5af   :  { %v780_v63 = vpack.c.bf16 %v770_v62, %v770_v62  ;;  %2201 = vmatmul.msk.bf16.vlgmr.msra.gmra.mxu2 %vm448_vm8, %v841_v61  ;;  %1009 = vmatpush.bf16.msra.mxu1 %v2230_v59  ;;  %v2437_v61 = vld [vmem:[%s3461_s9 + $0x14] sm:$0xf]  ;;  %v2218_v62 = vor.u32 %v2438_v60, %v2217_v52 }
 0x5b1   :  { %v868_v3 = vunpack.c.l.b16 %v780_v63  ;;  %v2219_v63 = vld [vmem:[%s3461_s9 + $0x18] sm:$0xf0] }
 0x5b3   :  { %v869_v7 = vpack.c.b16 %v868_v3, %v867_v1  ;;  %v2222_v1 = vor.u32 %v2437_v61, %v2219_v63 }
 0x5b5   :  { %2206 = vmatmul.msk.bf16.vlgmr.msra.gmra.mxu3 %vm448_vm8, %v869_v7  ;;  %1010 = vmatpush.bf16.msra.mxu1 %v2222_v1  ;;  %v2209_v7 = vld [vmem:[%s3461_s9] sm:$0xf] }
 0x5d7   :  { %v712_v9 = vpop.f32.mrf.mxu1 }
 0x5d8   :  { %v775_v10 = vpack.c.bf16 %v712_v9, %v712_v9  ;;  %v2435_v9 = vld [vmem:[%s3461_s9 + $0x4] sm:$0xf] }
 0x5da   :  { %v811_v13 = vunpack.c.l.b16 %v775_v10 }
 0x5df   :  { %v714_v11 = vpop.f32.mrf.mxu1 }
 0x5e0   :  { %v776_v12 = vpack.c.bf16 %v714_v11, %v714_v11  ;;  %v2210_v11 = vor.u32 %v2436_v8, %v2209_v7 }
 0x5e2   :  { %v812_v15 = vunpack.c.l.b16 %v776_v12  ;;  %v2211_v12 = vld [vmem:[%s3461_s9 + $0x8] sm:$0xf0] }
 0x5e4   :  { %v813_v17 = vpack.c.b16 %v812_v15, %v811_v13  ;;  %v2214_v13 = vor.u32 %v2435_v9, %v2211_v12 }
 0x5e6   :  { %2196 = vmatmul.msk.bf16.vlgmr.msrb.gmra.mxu1 %vm448_vm8, %v813_v17 }
 0x5e7   :  { %1011 = vmatpush.bf16.msra.mxu1 %v2214_v13 }
 0x5eb   :  { %1250 = vmatpush.bf16.msrb.mxu1 %v2849_v41 }
 0x5ef   :  { %1251 = vmatpush.bf16.msrb.mxu1 %v2868_v4 }
 0x5f3   :  { %1252 = vmatpush.bf16.msrb.mxu1 %v2874_v5  ;;  %v943_v5 = vperm.slane %v2858_v57, 2  ;;  %v2457_v57 = vld [vmem:[%s3462_s10 + $0x30] sm:$0xff] }
 0x5f7   :  { %1253 = vmatpush.bf16.msrb.mxu1 %v2880_v6 }
 0x621   :  { %v804_v42 = vpop.f32.mrf.mxu0 }
 0x622   :  { %v893_v25 = vsel %vm140_vm0, %v804_v42, 0.0 }
 0x629   :  { %v806_v31 = vpop.f32.mrf.mxu0 }
 0x62a   :  { %v900_v35 = vsel %vm140_vm0, %v806_v31, 0.0 }
 0x632   :  { %v860_v20 = vpop.f32.mrf.mxu2 }
 0x633   :  { %v896_v14 = vsel %vm140_vm0, %v860_v20, 0.0 }
 0x638   :  { %v888_v22 = vpop.f32.mrf.mxu3 }
 0x639   :  { %v898_v29 = vsel %vm140_vm0, %v888_v22, 0.0 }
 0x63a   :  { %v862_v32 = vpop.f32.mrf.mxu2 }
 0x63b   :  { %v903_v43 = vsel %vm140_vm0, %v862_v32, 0.0 }
 0x640   :  { %v890_v37 = vpop.f32.mrf.mxu3 }
 0x641   :  { %v905_v46 = vsel %vm140_vm0, %v890_v37, 0.0 }
 0x663   :  { %v832_v23 = vpop.f32.mrf.mxu1 }
 0x664   :  { %v894_v26 = vsel %vm140_vm0, %v832_v23, 0.0 }
 0x665   :  { %v895_v27 = vadd.f32 %v894_v26, %v893_v25 }
 0x667   :  { %v897_v28 = vadd.f32 %v896_v14, %v895_v27 }
 0x669   :  { %v899_v21 = vadd.f32 %v898_v29, %v897_v28 }
 0x66b   :  { %v834_v33 = vpop.f32.mrf.mxu1  ;;  %v3028_v34 = vadd.f32 %v899_v21, %v2777_v0 }
 0x66c   :  { %v901_v36 = vsel %vm140_vm0, %v834_v33, 0.0 }
 0x66d   :  { %v902_v18 = vadd.f32 %v901_v36, %v900_v35  ;;  %v909_v19 = vmul.f32 %v3028_v34, %v3028_v34 }
 0x66f   :  { %v904_v44 = vadd.f32 %v903_v43, %v902_v18  ;;  %v911_v45 = vsel %vm140_vm0, %v909_v19, 0.0  ;;  %v2458_v19 = vld [vmem:[%s3462_s10 + $0x38] sm:$0xff]  ;;  %v2456_v43 = vld [vmem:[%s3462_s10 + $0x28] sm:$0xff] }
 0x670   :  { %912 = vadd.xlane.f32.xlu0 %v911_v45  ;;  %1109 = vmatpush.bf16.msrb.mxu2 %v2458_v19  ;;  %v2454_v45 = vld [vmem:[%s3462_s10 + $0x18] sm:$0xff]  ;;  %v2295_v19 = vld [vmem:[%s3458_s6 + $0x68] sm:$0xf0] }
 0x671   :  { %v906_v16 = vadd.f32 %v905_v46, %v904_v44  ;;  %v2455_v44 = vld [vmem:[%s3462_s10 + $0x20] sm:$0xff]  ;;  %v2453_v46 = vld [vmem:[%s3462_s10 + $0x10] sm:$0xff] }
 0x673   :  { %v3038_v0 = vadd.f32 %v906_v16, %v2784_v2  ;;  %v2234_v2 = vor.u32 %v2442_v50, %v2233_v49  ;;  %v2451_v49 = vld [vmem:[%s3462_s10] sm:$0xff] }
 0x674   :  { %1110 = vmatpush.bf16.msrb.mxu2 %v2457_v57 }
 0x675   :  { %v910_v24 = vmul.f32 %v3038_v0, %v3038_v0  ;;  %994 = vmatpush.bf16.msra.mxu0 %v2234_v2 }
 0x677   :  { %v914_v48 = vsel %vm140_vm0, %v910_v24, 0.0 }
 0x678   :  { %915 = vadd.xlane.f32.xlu1 %v914_v48  ;;  %1111 = vmatpush.bf16.msrb.mxu2 %v2456_v43  ;;  %v2452_v48 = vld [vmem:[%s3462_s10 + $0x8] sm:$0xff]  ;;  %v2285_v43 = vld [vmem:[%s3458_s6 + $0x50] sm:$0xf] }
 0x679   :  { %995 = vmatpush.bf16.msra.mxu0 %v2226_v39 }
 0x67c   :  { %1112 = vmatpush.bf16.msrb.mxu2 %v2455_v44  ;;  %v2422_v44 = vld [vmem:[%s3458_s6 + $0x54] sm:$0xf0] }
 0x67d   :  { %996 = vmatpush.bf16.msra.mxu0 %v2218_v62 }
 0x680   :  { %1113 = vmatpush.bf16.msrb.mxu2 %v2454_v45  ;;  %v2421_v45 = vld [vmem:[%s3458_s6 + $0x54] sm:$0xf] }
 0x681   :  { %997 = vmatpush.bf16.msra.mxu0 %v2210_v11 }
 0x684   :  { %1114 = vmatpush.bf16.msrb.mxu2 %v2453_v46  ;;  %v2286_v46 = vor.u32 %v2422_v44, %v2285_v43  ;;  %v2673_v44 = vld [vmem:[%s3455_s3] sm:$0xff] }
 0x688   :  { %1115 = vmatpush.bf16.msrb.mxu2 %v2452_v48 }
 0x68c   :  { %1116 = vmatpush.bf16.msrb.mxu2 %v2451_v49  ;;  %v2277_v49 = vld [vmem:[%s3458_s6 + $0x40] sm:$0xf] }
 0x6e3   :  { %v913_v3 = vpop.xlane.xlu0 %912 }
 0x6e4   :  { %v917_v10 = vmul.f32 %v913_v3, %v2826_v30 }
 0x6e6   :  { %v919_v15 = vadd.f32 1e-06, %v917_v10 }
 0x6e8   :  { %2603 = vrsqrt.f32 %v919_v15  ;;  %vm927_vm10 = vweird.f32 %v919_v15 }
 0x6eb   :  { %v916_v17 = vpop.xlane.xlu1 %915 }
 0x6ec   :  { %v918_v42 = vmul.f32 %v916_v17, %v2826_v30 }
 0x6ee   :  { %v2604_v20 = vpop.eup %2603  ;;  %v920_v22 = vadd.f32 1e-06, %v918_v42 }
 0x6ef   :  { %v922_v23 = vmul.f32 %v2604_v20, %v919_v15  ;;  %vm928_vm9 = vweird.f32 %v2604_v20 }
 0x6f0   :  { %2605 = vrsqrt.f32 %v920_v22  ;;  %vm929_vm11 = vmor %vm927_vm10, %vm928_vm9  ;;  %vm937_vm13 = vweird.f32 %v920_v22 }
 0x6f1   :  { %v923_v25 = vmul.f32 %v2604_v20, %v922_v23 }
 0x6f3   :  { %v924_v26 = vmul.f32 0.5, %v923_v25 }
 0x6f5   :  { %v925_v27 = vsub.f32 1.5, %v924_v26 }
 0x6f6   :  { %v2606_v14 = vpop.eup %2605 }
 0x6f7   :  { %v932_v28 = vmul.f32 %v2606_v14, %v920_v22  ;;  %v926_v29 = vmul.f32 %v2604_v20, %v925_v27  ;;  %vm938_vm12 = vweird.f32 %v2606_v14 }
 0x6f8   :  { %vm939_vm14 = vmor %vm937_vm13, %vm938_vm12 }
 0x6f9   :  { %v933_v41 = vmul.f32 %v2606_v14, %v932_v28  ;;  %v930_v4 = vsel %vm929_vm11, %v2604_v20, %v926_v29 }
 0x6fa   :  { %v941_v33 = vmul.f32 %v930_v4, %v3028_v34 }
 0x6fb   :  { %v934_v31 = vmul.f32 0.5, %v933_v41 }
 0x6fc   :  { %v944_v36 = vmul.f32 %v943_v5, %v941_v33  ;;  %v2303_v33 = vld [vmem:[%s3458_s6 + $0x78] sm:$0xf0] }
 0x6fd   :  { %v935_v21 = vsub.f32 1.5, %v934_v31 }
 0x6ff   :  { %v936_v32 = vmul.f32 %v2606_v14, %v935_v21 }
 0x701   :  { %v940_v6 = vsel %vm939_vm14, %v2606_v14, %v936_v32  ;;  %v2426_v32 = vld [vmem:[%s3458_s6 + $0x74] sm:$0xf0] }
 0x702   :  { %v942_v35 = vmul.f32 %v940_v6, %v3038_v0 }
 0x704   :  { %v945_v37 = vmul.f32 %v943_v5, %v942_v35  ;;  %v2425_v5 = vld [vmem:[%s3458_s6 + $0x74] sm:$0xf]  ;;  %v2293_v35 = vld [vmem:[%s3458_s6 + $0x60] sm:$0xf] }
 0x705   :  { %v2306_v6 = vor.u32 %v2425_v5, %v2303_v33 }
 0x706   :  { %v946_v18 = vpack.c.bf16 %v945_v37, %v944_v36  ;;  %v2424_v36 = vld [vmem:[%s3458_s6 + $0x64] sm:$0xf0]  ;;  %v2423_v37 = vld [vmem:[%s3458_s6 + $0x64] sm:$0xf] }
 0x707   :  { %1230 = vmatpush.bf16.msrb.mxu0 %v2306_v6  ;;  %v2298_v57 = vor.u32 %v2423_v37, %v2295_v19 }
 0x708   :  { %2239 = vmatmul.msk.bf16.vlgmr.msra.gmra.mxu0 %vm140_vm0, %v946_v18  ;;  %2240 = vmatmul.msk.bf16.vlgmr.msra.gmra.mxu1 %vm140_vm0, %v946_v18  ;;  %v2294_v18 = vor.u32 %v2424_v36, %v2293_v35 }
 0x70b   :  { %1231 = vmatpush.bf16.msrb.mxu0 %v2298_v57 }
 0x785   :  { %v999_v16 = vpop.f32.mrf.mxu0  ;;  %v1013_v63 = vpop.f32.mrf.mxu1 }
 0x786   :  { %v2241_v24 = vmul.f32 -1.442695, %v999_v16 }
 0x788   :  { %2607 = vpow2.f32 %v2241_v24 }
 0x78d   :  { %v1001_v50 = vpop.f32.mrf.mxu0  ;;  %v1015_v22 = vpop.f32.mrf.mxu1 }
 0x78e   :  { %v2608_v51 = vpop.eup %2607  ;;  %v2242_v2 = vmul.f32 -1.442695, %v1001_v50 }
 0x78f   :  { %v1024_v53 = vadd.f32 1.0, %v2608_v51  ;;  %v2419_v51 = vld [vmem:[%s3458_s6 + $0x44] sm:$0xf] }
 0x790   :  { %2609 = vpow2.f32 %v2242_v2 }
 0x791   :  { %2611 = vrcp.f32 %v1024_v53  ;;  %v1037_v60 = vand.u32 2147483648, %v1024_v53  ;;  %vm1031_vm1 = vweird.f32 %v1024_v53  ;;  %v1035_v61 = vand.u32 2147483647, %v1024_v53 }
 0x793   :  { %v1038_v7 = vor.u32 1.1754944e-38, %v1037_v60  ;;  %vm1036_vm3 = vcmp.eq.f32.partialorder %v1035_v61, 8.507059e+37 }
 0x796   :  { %v2610_v54 = vpop.eup %2609 }
 0x797   :  { %v2612_v55 = vpop.eup %2611  ;;  %v1025_v56 = vadd.f32 1.0, %v2610_v54  ;;  %v2279_v54 = vld [vmem:[%s3458_s6 + $0x48] sm:$0xf0] }
 0x798   :  { %v1027_v38 = vmul.f32 %v2612_v55, %v1024_v53  ;;  %vm1032_vm15 = vweird.f32 %v2612_v55 }
 0x799   :  { %2613 = vrcp.f32 %v1025_v56  ;;  %vm1033_vm2 = vmor %vm1031_vm1, %vm1032_vm15  ;;  %v1052_v8 = vand.u32 2147483648, %v1025_v56  ;;  %v1050_v10 = vand.u32 2147483647, %v1025_v56  ;;  %vm1046_vm5 = vweird.f32 %v1025_v56 }
 0x79a   :  { %v1028_v39 = vsub.f32 1.0, %v1027_v38  ;;  %v2667_v38 = vld [vmem:[%s3456_s4 + $0x18] sm:$0xff] }
 0x79b   :  { %v1053_v13 = vor.u32 1.1754944e-38, %v1052_v8  ;;  %vm1051_vm7 = vcmp.eq.f32.partialorder %v1050_v10, 8.507059e+37 }
 0x79c   :  { %v1029_v58 = vmul.f32 %v2612_v55, %v1028_v39 }
 0x79e   :  { %v1030_v59 = vadd.f32 %v2612_v55, %v1029_v58  ;;  %v2668_v58 = vld [vmem:[%s3456_s4 + $0x10] sm:$0xff] }
 0x79f   :  { %v2614_v52 = vpop.eup %2613 }
 0x7a0   :  { %v1042_v62 = vmul.f32 %v2614_v52, %v1025_v56  ;;  %v1034_v1 = vsel %vm1033_vm2, %v2612_v55, %v1030_v59  ;;  %vm1047_vm4 = vweird.f32 %v2614_v52  ;;  %v2282_v55 = vor.u32 %v2419_v51, %v2279_v54  ;;  %v2676_v51 = vld [vmem:[%s3455_s3 + $0x8] sm:$0xff] }
 0x7a1   :  { %v1039_v11 = vsel %vm1036_vm3, %v1038_v7, %v1034_v1  ;;  %vm1048_vm6 = vmor %vm1046_vm5, %vm1047_vm4 }
 0x7a2   :  { %v1043_v3 = vsub.f32 1.0, %v1042_v62  ;;  %v1056_v15 = vmul.f32 %v1039_v11, %v999_v16  ;;  %v2287_v16 = vld [vmem:[%s3458_s6 + $0x58] sm:$0xf0]  ;;  %v2669_v62 = vld [vmem:[%s3456_s4 + $0x8] sm:$0xff] }
 0x7a3   :  { %v2290_v24 = vor.u32 %v2421_v45, %v2287_v16 }
 0x7a4   :  { %v1044_v9 = vmul.f32 %v2614_v52, %v1043_v3  ;;  %v1058_v23 = vmul.f32 %v1056_v15, %v1013_v63  ;;  %v2670_v3 = vld [vmem:[%s3456_s4] sm:$0xff] }
 0x7a5   :  { %1232 = vmatpush.bf16.msrb.mxu0 %v2290_v24 }
 0x7a6   :  { %v1045_v12 = vadd.f32 %v2614_v52, %v1044_v9 }
 0x7a8   :  { %v1049_v17 = vsel %vm1048_vm6, %v2614_v52, %v1045_v12 }
 0x7a9   :  { %v1054_v42 = vsel %vm1051_vm7, %v1053_v13, %v1049_v17  ;;  %1233 = vmatpush.bf16.msrb.mxu0 %v2282_v55 }
 0x7aa   :  { %v1057_v20 = vmul.f32 %v1054_v42, %v1001_v50  ;;  %v2420_v50 = vld [vmem:[%s3458_s6 + $0x44] sm:$0xf0]  ;;  %v3203_v42 = vld [vmem:[%s3457_s5] sm:$0x1f] }
 0x7ab   :  { %v2278_v53 = vor.u32 %v2420_v50, %v2277_v49  ;;  %v2675_v49 = vld [vmem:[%s3454_s2 + $0x8] sm:$0xff] }
 0x7ac   :  { %v1059_v25 = vmul.f32 %v1057_v20, %v1015_v22  ;;  %v1159_v20 = vperm.slane %v3203_v42, 1 }
 0x7ae   :  { %v1060_v26 = vpack.c.bf16 %v1059_v25, %v1058_v23 }
 0x7b0   :  { %1117 = vmatmul.bf16.vlgmr.msrb.gmra.mxu2 %v1060_v26 }
 0x833   :  { %v1118_v27 = vpop.f32.mrf.mxu2 }
 0x834   :  { %v3127_v14 = vadd.f32 %v1118_v27, %v3028_v34  ;;  %v2301_v34 = vld [vmem:[%s3458_s6 + $0x70] sm:$0xf]  ;;  %s2712_s6 = smov 128  }
 0x836   :  { %v1125_v28 = vmul.f32 %v3127_v14, %v3127_v14 }
 0x838   :  { %v1127_v29 = vsel %vm140_vm0, %v1125_v28, 0.0 }
 0x839   :  { %1128 = vadd.xlane.f32.xlu0 %v1127_v29 }
 0x83b   :  { %v1120_v41 = vpop.f32.mrf.mxu2 }
 0x83c   :  { %v3133_v31 = vadd.f32 %v1120_v41, %v3038_v0  ;;  %v2302_v0 = vor.u32 %v2426_v32, %v2301_v34  ;;  %v2672_v41 = vld [vmem:[%s3459_s7] sm:$0xf] }
 0x83d   :  { %v1163_v32 = vperm.slane %v2672_v41, 1 }
 0x83e   :  { %v1126_v4 = vmul.f32 %v3133_v31, %v3133_v31  ;;  %1216 = vmatpush.bf16.msrb.mxu3 %v2302_v0 }
 0x83f   :  { %v1167_v6 = vperm.slane %v1163_v32, 1 }
 0x840   :  { %v1130_v21 = vsel %vm140_vm0, %v1126_v4, 0.0  ;;  %v1164_v4 = vperm.slane %v2672_v41, 3 }
 0x841   :  { %1131 = vadd.xlane.f32.xlu0 %v1130_v21 }
 0x842   :  { %1217 = vmatpush.bf16.msrb.mxu3 %v2294_v18  ;;  %v1168_v21 = vperm.slane %v1164_v4, 1 }
 0x846   :  { %1218 = vmatpush.bf16.msrb.mxu3 %v2286_v46  ;;  %v2674_v46 = vld [vmem:[%s3454_s2] sm:$0xff] }
 0x84a   :  { %1219 = vmatpush.bf16.msrb.mxu3 %v2278_v53 }
 0x84e   :  { %1276 = vmatpush.bf16.msra.mxu3 %v2667_v38 }
 0x852   :  { %1277 = vmatpush.bf16.msra.mxu3 %v2668_v58 }
 0x856   :  { %1278 = vmatpush.bf16.msra.mxu3 %v2669_v62 }
 0x85a   :  { %1279 = vmatpush.bf16.msra.mxu3 %v2670_v3 }
 0x8ac   :  { %v1129_v48 = vpop.xlane.xlu0 %1128 }
 0x8ad   :  { %v1133_v2 = vmul.f32 %v1129_v48, %v2826_v30 }
 0x8af   :  { %v1135_v56 = vadd.f32 1e-06, %v1133_v2 }
 0x8b1   :  { %2615 = vrsqrt.f32 %v1135_v56  ;;  %vm1143_vm10 = vweird.f32 %v1135_v56 }
 0x8b4   :  { %v1132_v39 = vpop.xlane.xlu0 %1131 }
 0x8b5   :  { %v1134_v59 = vmul.f32 %v1132_v39, %v2826_v30 }
 0x8b7   :  { %v2616_v52 = vpop.eup %2615  ;;  %v1136_v60 = vadd.f32 1e-06, %v1134_v59 }
 0x8b8   :  { %v1138_v61 = vmul.f32 %v2616_v52, %v1135_v56  ;;  %vm1144_vm9 = vweird.f32 %v2616_v52 }
 0x8b9   :  { %2617 = vrsqrt.f32 %v1136_v60  ;;  %vm1145_vm11 = vmor %vm1143_vm10, %vm1144_vm9  ;;  %vm1153_vm13 = vweird.f32 %v1136_v60 }
 0x8ba   :  { %v1139_v63 = vmul.f32 %v2616_v52, %v1138_v61 }
 0x8bc   :  { %v1140_v1 = vmul.f32 0.5, %v1139_v63 }
 0x8be   :  { %v1141_v7 = vsub.f32 1.5, %v1140_v1 }
 0x8bf   :  { %v2618_v8 = vpop.eup %2617 }
 0x8c0   :  { %v1148_v9 = vmul.f32 %v2618_v8, %v1136_v60  ;;  %v1142_v10 = vmul.f32 %v2616_v52, %v1141_v7  ;;  %vm1154_vm12 = vweird.f32 %v2618_v8 }
 0x8c1   :  { %vm1155_vm14 = vmor %vm1153_vm13, %vm1154_vm12 }
 0x8c2   :  { %v1149_v11 = vmul.f32 %v2618_v8, %v1148_v9  ;;  %v1146_v13 = vsel %vm1145_vm11, %v2616_v52, %v1142_v10 }
 0x8c3   :  { %v1157_v22 = vmul.f32 %v1146_v13, %v3127_v14 }
 0x8c4   :  { %v1150_v12 = vmul.f32 0.5, %v1149_v11 }
 0x8c5   :  { %v1160_v26 = vmul.f32 %v1159_v20, %v1157_v22 }
 0x8c6   :  { %v1151_v15 = vsub.f32 1.5, %v1150_v12 }
 0x8c8   :  { %v1152_v17 = vmul.f32 %v2618_v8, %v1151_v15 }
 0x8ca   :  { %v1156_v23 = vsel %vm1155_vm14, %v2618_v8, %v1152_v17 }
 0x8cb   :  { %v1158_v25 = vmul.f32 %v1156_v23, %v3133_v31 }
 0x8cd   :  { %v1161_v27 = vmul.f32 %v1159_v20, %v1158_v25 }
 0x8cf   :  { %v1162_v28 = vpack.c.bf16 %v1161_v27, %v1160_v26 }
 0x8d1   :  { %2307 = vmatmul.msk.bf16.vlgmr.msrb.gmra.mxu3 %vm140_vm0, %v1162_v28  ;;  %2308 = vmatmul.msk.bf16.vlgmr.msrb.gmra.mxu0 %vm140_vm0, %v1162_v28 }
 0x94e   :  { %v1235_v29 = vpop.f32.mrf.mxu0 }
 0x94f   :  { %v3213_v0 = vadd.f32 %v1235_v29, %v1168_v21 }
 0x954   :  { %v1221_v34 = vpop.f32.mrf.mxu3 }
 0x955   :  { %v1222_v37 = vadd.f32 %v1221_v34, %v1167_v6 }
 0x956   :  { %v1237_v5 = vpop.f32.mrf.mxu0 }
 0x957   :  { %v3215_v33 = vadd.f32 %v1237_v5, %v1168_v21  ;;  %v1240_v16 = vmul.f32 %v2674_v46, %v1222_v37  ;;  %v1264_v63 = vmul.f32 %v1222_v37, %v2924_v47 }
 0x959   :  { %v3219_v35 = vpack.i.bf16 %v3215_v33, %v3213_v0 }
 0x95c   :  { %v1223_v36 = vpop.f32.mrf.mxu3 }
 0x95d   :  { %v1224_v18 = vadd.f32 %v1223_v36, %v1167_v6 }
 0x95f   :  { %v1242_v19 = vpack.c.bf16 %v1224_v18, %v1222_v37  ;;  %v1241_v50 = vmul.f32 %v2675_v49, %v1224_v18  ;;  %v1265_v3 = vmul.f32 %v1224_v18, %v2922_v40 }
 0x961   :  { %1267 = vrot.lane.b32.xlu0 %v1242_v19, %s2707_s17  ;;  %2309 = vmatmul.msk.bf16.vlgmr.msrb.gmra.mxu1 %vm140_vm0, %v1242_v19 }
 0x9d3   :  { %v1268_v57 = vpop.permute.xlu0 %1267 }
 0x9d4   :  { %2310 = vmatmul.msk.bf16.vlgmr.msra.gmra.mxu3 %vm140_vm0, %v1268_v57  ;;  %v1375_v57 = vpack.c.bf16 %v3215_v33, %v3215_v33 }
 0x9d6   :  { %v1614_v46 = vunpack.c.l.b16 %v1375_v57 }
 0x9de   :  { %v1255_v43 = vpop.f32.mrf.mxu1 }
 0x9df   :  { %v1260_v45 = vmul.f32 %v2673_v44, %v1255_v43  ;;  %v1374_v43 = vpack.c.bf16 %v3213_v0, %v3213_v0 }
 0x9e1   :  { %v1262_v24 = vadd.f32 %v1260_v45, %v1240_v16  ;;  %v1613_v16 = vunpack.c.l.b16 %v1374_v43 }
 0x9e3   :  { %v1318_v53 = vpack.c.bf16 %v1262_v24, %v1262_v24 }
 0x9e5   :  { %v3236_v38 = vunpack.c.l.b16 %v1318_v53 }
 0x9e6   :  { %v1257_v48 = vpop.f32.mrf.mxu1 }
 0x9e7   :  { %v1261_v2 = vmul.f32 %v2676_v51, %v1257_v48 }
 0x9e9   :  { %v1263_v54 = vadd.f32 %v1261_v2, %v1241_v50  ;;  %v1615_v50 = vpack.c.b16 %v1614_v46, %v1613_v16 }
 0x9eb   :  { %v1319_v55 = vpack.c.bf16 %v1263_v54, %v1263_v54  ;;  %v2540_v56 = vpack.i.bf16 %v1263_v54, %v1262_v24 }
 0x9ed   :  { %v3238_v39 = vunpack.c.l.b16 %v1319_v55 }
 0x9ef   :  { %v1386_v58 = vpack.c.b16 %v3238_v39, %v3236_v38 }
 0xa57   :  { %v1281_v59 = vpop.f32.mrf.mxu3 }
 0xa58   :  { %v1286_v52 = vmul.f32 %v2673_v44, %v1281_v59 }
 0xa5a   :  { %1290 = vrot.lane.b32.xlu2 %v1286_v52, %s2707_s17 }
 0xa5f   :  { %v1283_v60 = vpop.f32.mrf.mxu3 }
 0xa60   :  { %v1287_v61 = vmul.f32 %v2676_v51, %v1283_v60 }
 0xa62   :  { %1292 = vrot.lane.b32.xlu0 %v1287_v61, %s2707_s17 }
 0xab4   :  { %v1291_v62 = vpop.permute.xlu2 %1290 }
 0xab5   :  { %v1296_v1 = vadd.f32 %v1291_v62, %v1264_v63 }
 0xab7   :  { %v1346_v9 = vpack.c.bf16 %v1296_v1, %v1296_v1 }
 0xab9   :  { %v1389_v12 = vunpack.c.l.b16 %v1346_v9 }
 0xad4   :  { %v1293_v7 = vpop.permute.xlu0 %1292 }
 0xad5   :  { %v1297_v8 = vadd.f32 %v1293_v7, %v1265_v3 }
 0xad7   :  { %v2525_v10 = vpack.i.bf16 %v1297_v8, %v1296_v1  ;;  %v1347_v11 = vpack.c.bf16 %v1297_v8, %v1297_v8 }
 0xad9   :  { %2526 = vrot.lane.b32.xlu0 %v2525_v10, %s2708_s14  ;;  %2521 = vrot.lane.b32.xlu1 %v2525_v10, %s2710_s16  ;;  %v1390_v13 = vunpack.c.l.b16 %v1347_v11 }
 0xadb   :  { %v1391_v15 = vpack.c.b16 %v1390_v13, %v1389_v12 }
 0xae1   :  { %2531 = vrot.lane.b32.xlu0 %v2525_v10, %s2709_s15  ;;  %2541 = vrot.lane.b32.xlu1 %v2540_v56, %s2708_s14 }
 0xae9   :  { %2546 = vrot.lane.b32.xlu1 %v2540_v56, %s2709_s15  ;;  %2536 = vrot.lane.b32.xlu0 %v2540_v56, %s2710_s16 }
 0xaf1   :  { %1392 = vrot.lane.b32.xlu0 %v1391_v15, %s2707_s17 }
 0xb4b   :  { %v2527_v40 = vpop.permute.xlu0 %2526  ;;  %v2522_v47 = vpop.permute.xlu1 %2521 }
 0xb4c   :  { %v2524_v17 = vunpack.i.h.bf16 %v2522_v47  ;;  %v2523_v20 = vunpack.i.l.bf16 %v2522_v47  ;;  %v2529_v22 = vunpack.i.h.bf16 %v2527_v40  ;;  %v2528_v23 = vunpack.i.l.bf16 %v2527_v40 }
 0xb4e   :  { %v1351_v25 = vpack.c.bf16 %v2524_v17, %v2524_v17  ;;  %v1350_v26 = vpack.c.bf16 %v2523_v20, %v2523_v20  ;;  %v1353_v29 = vpack.c.bf16 %v2529_v22, %v2529_v22  ;;  %v1352_v41 = vpack.c.bf16 %v2528_v23, %v2528_v23  ;;  %v2677_v20 = vld [vmem:[%s3453_s1] sm:$0xff] }
 0xb50   :  { %v1454_v27 = vunpack.c.l.b16 %v1351_v25  ;;  %v1453_v28 = vunpack.c.l.b16 %v1350_v26  ;;  %v1486_v34 = vunpack.c.l.b16 %v1353_v29  ;;  %v1485_v32 = vunpack.c.l.b16 %v1352_v41 }
 0xb52   :  { %v1455_v4 = vpack.c.b16 %v1454_v27, %v1453_v28  ;;  %v1487_v18 = vpack.c.b16 %v1486_v34, %v1485_v32 }
 0xb53   :  { %v2532_v21 = vpop.permute.xlu0 %2531  ;;  %v2542_v51 = vpop.permute.xlu1 %2541 }
 0xb54   :  { %1456 = vrot.lane.b32.xlu2 %v1455_v4, %s2707_s17  ;;  %v2534_v5 = vunpack.i.h.bf16 %v2532_v21  ;;  %v2533_v6 = vunpack.i.l.bf16 %v2532_v21  ;;  %v2544_v56 = vunpack.i.h.bf16 %v2542_v51  ;;  %v2543_v59 = vunpack.i.l.bf16 %v2542_v51 }
 0xb56   :  { %v1349_v36 = vpack.c.bf16 %v2534_v5, %v2534_v5  ;;  %v1348_v37 = vpack.c.bf16 %v2533_v6, %v2533_v6  ;;  %v1325_v61 = vpack.c.bf16 %v2544_v56, %v2544_v56  ;;  %v1324_v62 = vpack.c.bf16 %v2543_v59, %v2543_v59  ;;  %v2678_v6 = vld [vmem:[%s3453_s1 + $0x8] sm:$0xff] }
 0xb58   :  { %v1422_v44 = vunpack.c.l.b16 %v1349_v36  ;;  %v1421_v45 = vunpack.c.l.b16 %v1348_v37  ;;  %v1480_v3 = vunpack.c.l.b16 %v1324_v62 }
 0xb5a   :  { %v1423_v24 = vpack.c.b16 %v1422_v44, %v1421_v45 }
 0xb5b   :  { %v2537_v19 = vpop.permute.xlu0 %2536  ;;  %v2547_v1 = vpop.permute.xlu1 %2546 }
 0xb5c   :  { %1488 = vrot.lane.b32.xlu2 %v1487_v18, %s2707_s17  ;;  %v2539_v33 = vunpack.i.h.bf16 %v2537_v19  ;;  %v2538_v0 = vunpack.i.l.bf16 %v2537_v19  ;;  %v2549_v7 = vunpack.i.h.bf16 %v2547_v1  ;;  %v2548_v8 = vunpack.i.l.bf16 %v2547_v1 }
 0xb5e   :  { %v1323_v2 = vpack.c.bf16 %v2539_v33, %v2539_v33  ;;  %v1322_v53 = vpack.c.bf16 %v2538_v0, %v2538_v0  ;;  %v1321_v10 = vpack.c.bf16 %v2549_v7, %v2549_v7  ;;  %v1320_v11 = vpack.c.bf16 %v2548_v8, %v2548_v8 }
 0xb60   :  { %v1449_v52 = vunpack.c.l.b16 %v1323_v2  ;;  %v1448_v60 = vunpack.c.l.b16 %v1322_v53  ;;  %v1417_v15 = vunpack.c.l.b16 %v1321_v10  ;;  %v1416_v40 = vunpack.c.l.b16 %v1320_v11 }
 0xb62   :  { %v1450_v63 = vpack.c.b16 %v1449_v52, %v1448_v60  ;;  %v1418_v47 = vpack.c.b16 %v1417_v15, %v1416_v40 }
 0xb63   :  { %v1393_v48 = vpop.permute.xlu0 %1392 }
 0xb64   :  { %v1398_v49 = vsel %vm448_vm8, %v1393_v48, 0  ;;  %1424 = vrot.lane.b32.xlu2 %v1423_v24, %s2707_s17 }
 0xb65   :  { %1407 = vmatpush.bf16.xpose.msra.mxu0 %v1398_v49 }
 0xb6c   :  { %2311 = vmatmul.msk.bf16.vlgmr.msra.gmra.mxu0 %vm448_vm8, %v1386_v58  ;;  %v1481_v58 = vunpack.c.l.b16 %v1325_v61 }
 0xb6d   :  { %1627 = vmatpush.bf16.msrb.mxu0 %v1615_v50 }
 0xb6e   :  { %v1482_v9 = vpack.c.b16 %v1481_v58, %v1480_v3 }
 0xbae   :  { %v1457_v54 = vpop.permute.xlu2 %1456 }
 0xbaf   :  { %v1462_v55 = vsel %vm448_vm8, %v1457_v54, 0 }
 0xbb0   :  { %1471 = vmatpush.bf16.xpose.msra.mxu2 %v1462_v55 }
 0xbb6   :  { %v1489_v38 = vpop.permute.xlu2 %1488 }
 0xbb7   :  { %v1494_v39 = vsel %vm448_vm8, %v1489_v38, 0  ;;  %2313 = vmatmul.msk.bf16.vlgmr.msra.gmra.mxu2 %vm448_vm8, %v1450_v63 }
 0xbb8   :  { %1503 = vmatpush.bf16.xpose.msrb.mxu3 %v1494_v39 }
 0xbbe   :  { %v1425_v12 = vpop.permute.xlu2 %1424 }
 0xbbf   :  { %v1430_v13 = vsel %vm448_vm8, %v1425_v12, 0  ;;  %2314 = vmatmul.msk.bf16.vlgmr.msrb.gmra.mxu3 %vm448_vm8, %v1482_v9 }
 0xbc0   :  { %1439 = vmatpush.bf16.xpose.msra.mxu1 %v1430_v13 }
 0xbc7   :  { %2312 = vmatmul.msk.bf16.vlgmr.msra.gmra.mxu1 %vm448_vm8, %v1418_v47 }
 0xbe9   :  { %v1409_v17 = vpop.f32.mrf.mxu0 }
 0xbea   :  { %v1410_v22 = vadd.f32 %v2677_v20, %v1409_v17 }
 0xbec   :  { %v1510_v23 = vsel %vm448_vm8, %v1410_v22, -inf }
 0xbed   :  { %1511 = vmax.xlane.f32.xlu0 %v1510_v23 }
 0xbf1   :  { %v1411_v34 = vpop.f32.mrf.mxu0 }
 0xbf2   :  { %v1412_v36 = vadd.f32 %v2678_v6, %v1411_v34 }
 0xbf4   :  { %v1513_v57 = vsel %vm448_vm8, %v1412_v36, -inf }
 0xc3a   :  { %v1473_v25 = vpop.f32.mrf.mxu2 }
 0xc3b   :  { %v1474_v26 = vadd.f32 %v2677_v20, %v1473_v25 }
 0xc3d   :  { %v1522_v27 = vsel %vm448_vm8, %v1474_v26, -inf }
 0xc3e   :  { %1523 = vmax.xlane.f32.xlu0 %v1522_v27 }
 0xc42   :  { %v1505_v28 = vpop.f32.mrf.mxu3  ;;  %v1475_v5 = vpop.f32.mrf.mxu2 }
 0xc43   :  { %v1506_v29 = vadd.f32 %v2677_v20, %v1505_v28  ;;  %v1476_v37 = vadd.f32 %v2678_v6, %v1475_v5 }
 0xc44   :  { %v1441_v41 = vpop.f32.mrf.mxu1 }
 0xc45   :  { %v1442_v4 = vadd.f32 %v2677_v20, %v1441_v41  ;;  %v1528_v21 = vsel %vm448_vm8, %v1506_v29, -inf  ;;  %v1525_v43 = vsel %vm448_vm8, %v1476_v37, -inf }
 0xc46   :  { %1529 = vmax.xlane.f32.xlu1 %v1528_v21 }
 0xc47   :  { %v1516_v32 = vsel %vm448_vm8, %v1442_v4, -inf }
 0xc48   :  { %1517 = vmax.xlane.f32.xlu2 %v1516_v32 }
 0xc4a   :  { %v1507_v45 = vpop.f32.mrf.mxu3 }
 0xc4b   :  { %v1508_v46 = vadd.f32 %v2678_v6, %v1507_v45 }
 0xc4c   :  { %v1443_v18 = vpop.f32.mrf.mxu1 }
 0xc4d   :  { %v3281_v19 = vadd.f32 %v2678_v6, %v1443_v18  ;;  %v1531_v16 = vsel %vm448_vm8, %v1508_v46, -inf }
 0xc4e   :  { %1514 = vmax.xlane.f32.xlu1 %v1513_v57 }
 0xc4f   :  { %v1519_v44 = vsel %vm448_vm8, %v3281_v19, -inf }
 0xc50   :  { %1526 = vmax.xlane.f32.xlu2 %v1525_v43  ;;  %1520 = vmax.xlane.f32.xlu0 %v1519_v44 }
 0xc58   :  { %1532 = vmax.xlane.f32.xlu2 %v1531_v16 }
 0xc60   :  { %v1512_v24 = vpop.xlane.xlu0 %1511 }
 0xc61   :  { %v1534_v48 = vsub.f32 %v1410_v22, %v1512_v24 }
 0xc63   :  { %v1542_v49 = vmul.f32 1.442695, %v1534_v48 }
 0xc64   :  { %2556 = vrot.lane.b32.xlu0 %v3219_v35, %s2708_s14 }
 0xc65   :  { %2619 = vpow2.f32 %v1542_v49 }
 0xc6b   :  { %v3290_v50 = vpop.eup %2619 }
 0xc6c   :  { %v1558_v33 = vsel %vm448_vm8, %v3290_v50, 0.0 }
 0xc6d   :  { %1559 = vadd.xlane.f32.xlu1 %v1558_v33 }
 0xc70   :  { %2551 = vrot.lane.b32.xlu2 %v3219_v35, %s2710_s16 }
 0xcb1   :  { %v1524_v56 = vpop.xlane.xlu0 %1523 }
 0xcb2   :  { %v1538_v62 = vsub.f32 %v1474_v26, %v1524_v56 }
 0xcb4   :  { %v1550_v58 = vmul.f32 1.442695, %v1538_v62 }
 0xcb9   :  { %v1530_v0 = vpop.xlane.xlu1 %1529 }
 0xcba   :  { %v1540_v51 = vsub.f32 %v1506_v29, %v1530_v0 }
 0xcbb   :  { %v1518_v2 = vpop.xlane.xlu2 %1517 }
 0xcbc   :  { %v1554_v53 = vmul.f32 1.442695, %v1540_v51  ;;  %v1536_v54 = vsub.f32 %v1442_v4, %v1518_v2 }
 0xcbe   :  { %2621 = vpow2.f32 %v1554_v53  ;;  %v1546_v55 = vmul.f32 1.442695, %v1536_v54 }
 0xcc0   :  { %2623 = vpow2.f32 %v1546_v55 }
 0xcc1   :  { %v1515_v59 = vpop.xlane.xlu1 %1514 }
 0xcc2   :  { %v1535_v52 = vsub.f32 %v1412_v36, %v1515_v59 }
 0xcc3   :  { %v1527_v60 = vpop.xlane.xlu2 %1526  ;;  %v1521_v13 = vpop.xlane.xlu0 %1520 }
 0xcc4   :  { %v3296_v61 = vpop.eup %2621  ;;  %v1544_v63 = vmul.f32 1.442695, %v1535_v52  ;;  %v1539_v1 = vsub.f32 %v1476_v37, %v1527_v60  ;;  %v1537_v20 = vsub.f32 %v3281_v19, %v1521_v13 }
 0xcc5   :  { %v1576_v38 = vsel %vm448_vm8, %v3296_v61, 0.0 }
 0xcc6   :  { %2625 = vpow2.f32 %v1544_v63  ;;  %v1552_v39 = vmul.f32 1.442695, %v1539_v1  ;;  %1577 = vadd.xlane.f32.xlu0 %v1576_v38  ;;  %v3300_v3 = vpop.eup %2623  ;;  %v1548_v4 = vmul.f32 1.442695, %v1537_v20 }
 0xcc7   :  { %v1564_v10 = vsel %vm448_vm8, %v3300_v3, 0.0 }
 0xcc8   :  { %2627 = vpow2.f32 %v1552_v39 }
 0xcc9   :  { %2629 = vpow2.f32 %v1550_v58 }
 0xccb   :  { %v1533_v7 = vpop.xlane.xlu2 %1532 }
 0xccc   :  { %v2626_v8 = vpop.eup %2625  ;;  %v1541_v9 = vsub.f32 %v1508_v46, %v1533_v7 }
 0xccd   :  { %v1561_v11 = vsel %vm448_vm8, %v2626_v8, 0.0 }
 0xcce   :  { %v2628_v12 = vpop.eup %2627  ;;  %1565 = vadd.xlane.f32.xlu0 %v1564_v10  ;;  %1562 = vadd.xlane.f32.xlu1 %v1561_v11  ;;  %v1556_v40 = vmul.f32 1.442695, %v1541_v9 }
 0xccf   :  { %v1573_v15 = vsel %vm448_vm8, %v2628_v12, 0.0  ;;  %v3306_v47 = vpop.eup %2629 }
 0xcd0   :  { %1574 = vadd.xlane.f32.xlu2 %v1573_v15  ;;  %2631 = vpow2.f32 %v1556_v40  ;;  %v1570_v25 = vsel %vm448_vm8, %v3306_v47, 0.0 }
 0xcd1   :  { %2633 = vpow2.f32 %v1548_v4 }
 0xcd3   :  { %v2552_v17 = vpop.permute.xlu2 %2551 }
 0xcd4   :  { %v2554_v22 = vunpack.i.h.bf16 %v2552_v17  ;;  %v2553_v23 = vunpack.i.l.bf16 %v2552_v17 }
 0xcd6   :  { %v1379_v26 = vpack.c.bf16 %v2554_v22, %v2554_v22  ;;  %v1378_v27 = vpack.c.bf16 %v2553_v23, %v2553_v23  ;;  %1571 = vadd.xlane.f32.xlu1 %v1570_v25  ;;  %v2557_v28 = vpop.permute.xlu0 %2556  ;;  %v2632_v6 = vpop.eup %2631 }
 0xcd7   :  { %v2559_v29 = vunpack.i.h.bf16 %v2557_v28  ;;  %v2558_v41 = vunpack.i.l.bf16 %v2557_v28  ;;  %v1579_v57 = vsel %vm448_vm8, %v2632_v6, 0.0  ;;  %v2634_v43 = vpop.eup %2633 }
 0xcd8   :  { %v1670_v21 = vunpack.c.l.b16 %v1379_v26  ;;  %v1669_v34 = vunpack.c.l.b16 %v1378_v27  ;;  %v1567_v44 = vsel %vm448_vm8, %v2634_v43, 0.0 }
 0xcd9   :  { %v1381_v32 = vpack.c.bf16 %v2559_v29, %v2559_v29  ;;  %v1380_v5 = vpack.c.bf16 %v2558_v41, %v2558_v41 }
 0xcda   :  { %v1671_v36 = vpack.c.b16 %v1670_v21, %v1669_v34 }
 0xcdb   :  { %v1698_v37 = vunpack.c.l.b16 %v1381_v32  ;;  %v1697_v18 = vunpack.c.l.b16 %v1380_v5 }
 0xcdc   :  { %1683 = vmatpush.bf16.msrb.mxu2 %v1671_v36  ;;  %v2431_v36 = vld [vmem:[%s3460_s8 + $0x20] sm:$0xff] }
 0xcdd   :  { %v1699_v19 = vpack.c.b16 %v1698_v37, %v1697_v18  ;;  %1747 = vmatpush.bf16.msra.mxu0 %v2431_v36  ;;  %v2434_v18 = vld [vmem:[%s3460_s8 + $0x38] sm:$0xff] }
 0xcde   :  { %1580 = vadd.xlane.f32.xlu1 %v1579_v57  ;;  %v2450_v36 = vld [vmem:[%s3461_s9 + $0x74] sm:$0xf0] }
 0xcdf   :  { %1711 = vmatpush.bf16.msra.mxu3 %v1699_v19  ;;  %v2432_v19 = vld [vmem:[%s3460_s8 + $0x28] sm:$0xff] }
 0xce0   :  { %v1560_v45 = vpop.xlane.xlu1 %1559 }
 0xce1   :  { %2635 = vrcp.f32 %v1560_v45 }
 0xce3   :  { %1831 = vmatpush.bf16.msrb.mxu3 %v2434_v18 }
 0xce6   :  { %1568 = vadd.xlane.f32.xlu1 %v1567_v44 }
 0xce7   :  { %v2636_v16 = vpop.eup %2635 }
 0xce8   :  { %2561 = vrot.lane.b32.xlu2 %v3219_v35, %s2709_s15  ;;  %v1590_v48 = vmul.f32 %v2636_v16, %v3290_v50  ;;  %s2711_s15 = smov [#allocation2]  }
 0xce9   :  { %s2113_s16 = sshll.u32 %s2711_s15, 4  ;;  %s2114_s16 = int_to_ptr.vmem [resolvable:$true] %s2113_s16 }
 0xcea   :  { %v1598_v0 = vpack.c.bf16 %v1590_v48, %v1590_v48 }
 0xcec   :  { %v1608_v59 = vunpack.c.l.b16 %v1598_v0 }
 0xd39   :  { %v1578_v49 = vpop.xlane.xlu0 %1577 }
 0xd41   :  { %v1563_v46 = vpop.xlane.xlu1 %1562  ;;  %v1566_v58 = vpop.xlane.xlu0 %1565 }
 0xd42   :  { %2637 = vrcp.f32 %v1563_v46 }
 0xd43   :  { %v1575_v24 = vpop.xlane.xlu2 %1574 }
 0xd44   :  { %2639 = vrcp.f32 %v1575_v24 }
 0xd48   :  { %v2638_v33 = vpop.eup %2637 }
 0xd49   :  { %v1591_v51 = vmul.f32 %v2638_v33, %v2626_v8  ;;  %v1572_v2 = vpop.xlane.xlu1 %1571 }
 0xd4a   :  { %v2640_v53 = vpop.eup %2639  ;;  %2641 = vrcp.f32 %v1572_v2 }
 0xd4b   :  { %v1599_v54 = vpack.c.bf16 %v1591_v51, %v1591_v51  ;;  %v2562_v55 = vpop.permute.xlu2 %2561  ;;  %2643 = vrcp.f32 %v1578_v49  ;;  %v1595_v60 = vmul.f32 %v2640_v53, %v2628_v12 }
 0xd4c   :  { %v2564_v35 = vunpack.i.h.bf16 %v2562_v55  ;;  %v2563_v56 = vunpack.i.l.bf16 %v2562_v55 }
 0xd4d   :  { %v1609_v52 = vunpack.c.l.b16 %v1599_v54  ;;  %v1603_v7 = vpack.c.bf16 %v1595_v60, %v1595_v60 }
 0xd4e   :  { %v1377_v62 = vpack.c.bf16 %v2564_v35, %v2564_v35  ;;  %v1376_v63 = vpack.c.bf16 %v2563_v56, %v2563_v56 }
 0xd4f   :  { %v1610_v1 = vpack.c.b16 %v1609_v52, %v1608_v59  ;;  %v1665_v15 = vunpack.c.l.b16 %v1603_v7 }
 0xd50   :  { %v2642_v38 = vpop.eup %2641  ;;  %v1642_v50 = vunpack.c.l.b16 %v1377_v62  ;;  %v1641_v39 = vunpack.c.l.b16 %v1376_v63 }
 0xd51   :  { %v1594_v8 = vmul.f32 %v2642_v38, %v3306_v47  ;;  %2315 = vmatmul.msk.bf16.vlgmr.msrb.gmra.mxu0 %vm448_vm8, %v1610_v1  ;;  %v1581_v9 = vpop.xlane.xlu1 %1580  ;;  %v2644_v10 = vpop.eup %2643 }
 0xd52   :  { %v1643_v11 = vpack.c.b16 %v1642_v50, %v1641_v39  ;;  %2645 = vrcp.f32 %v1581_v9  ;;  %v1596_v12 = vmul.f32 %v2644_v10, %v3296_v61 }
 0xd53   :  { %v1602_v13 = vpack.c.bf16 %v1594_v8, %v1594_v8  ;;  %2647 = vrcp.f32 %v1566_v58 }
 0xd54   :  { %1655 = vmatpush.bf16.msrb.mxu1 %v1643_v11  ;;  %v1604_v22 = vpack.c.bf16 %v1596_v12, %v1596_v12 }
 0xd55   :  { %v1664_v40 = vunpack.c.l.b16 %v1602_v13 }
 0xd56   :  { %v1692_v27 = vunpack.c.l.b16 %v1604_v22 }
 0xd57   :  { %v1666_v17 = vpack.c.b16 %v1665_v15, %v1664_v40 }
 0xd58   :  { %v2646_v20 = vpop.eup %2645  ;;  %1775 = vmatpush.bf16.msra.mxu1 %v2432_v19  ;;  %v2357_v19 = vld [vmem:[%s3461_s9 + $0x60] sm:$0xf] }
 0xd59   :  { %v1597_v23 = vmul.f32 %v2646_v20, %v2632_v6  ;;  %2317 = vmatmul.msk.bf16.vlgmr.msrb.gmra.mxu2 %vm448_vm8, %v1666_v17  ;;  %v1569_v47 = vpop.xlane.xlu1 %1568  ;;  %v2648_v25 = vpop.eup %2647 }
 0xd5a   :  { %2649 = vrcp.f32 %v1569_v47  ;;  %v1592_v28 = vmul.f32 %v2648_v25, %v3300_v3  ;;  %v2433_v3 = vld [vmem:[%s3460_s8 + $0x30] sm:$0xff] }
 0xd5b   :  { %v1605_v26 = vpack.c.bf16 %v1597_v23, %v1597_v23  ;;  %1803 = vmatpush.bf16.msra.mxu2 %v2433_v3  ;;  %v2449_v3 = vld [vmem:[%s3461_s9 + $0x74] sm:$0xf] }
 0xd5c   :  { %v1600_v21 = vpack.c.bf16 %v1592_v28, %v1592_v28 }
 0xd5d   :  { %v1693_v29 = vunpack.c.l.b16 %v1605_v26 }
 0xd5e   :  { %v1636_v32 = vunpack.c.l.b16 %v1600_v21 }
 0xd5f   :  { %v1694_v41 = vpack.c.b16 %v1693_v29, %v1692_v27 }
 0xd60   :  { %v2650_v4 = vpop.eup %2649 }
 0xd61   :  { %v1593_v61 = vmul.f32 %v2650_v4, %v2634_v43  ;;  %2318 = vmatmul.msk.bf16.vlgmr.msra.gmra.mxu3 %vm448_vm8, %v1694_v41 }
 0xd63   :  { %v1601_v34 = vpack.c.bf16 %v1593_v61, %v1593_v61 }
 0xd65   :  { %v1637_v5 = vunpack.c.l.b16 %v1601_v34 }
 0xd67   :  { %v1638_v6 = vpack.c.b16 %v1637_v5, %v1636_v32 }
 0xd69   :  { %2316 = vmatmul.msk.bf16.vlgmr.msrb.gmra.mxu1 %vm448_vm8, %v1638_v6  ;;  %v2365_v6 = vld [vmem:[%s3461_s9 + $0x70] sm:$0xf] }
 0xdce   :  { %v1629_v37 = vpop.f32.mrf.mxu0 }
 0xdcf   :  { %v1718_v57 = vpack.c.bf16 %v1629_v37, %v1629_v37  ;;  %v2367_v37 = vld [vmem:[%s3461_s9 + $0x78] sm:$0xf0] }
 0xdd0   :  { %v2370_v18 = vor.u32 %v2449_v3, %v2367_v37 }
 0xdd1   :  { %v1728_v45 = vunpack.c.l.b16 %v1718_v57  ;;  %v2448_v57 = vld [vmem:[%s3461_s9 + $0x64] sm:$0xf0] }
 0xdd2   :  { %1953 = vmatpush.bf16.msrb.mxu1 %v2370_v18 }
 0xdd6   :  { %v1631_v43 = vpop.f32.mrf.mxu0 }
 0xdd7   :  { %v1719_v44 = vpack.c.bf16 %v1631_v43, %v1631_v43  ;;  %v2447_v43 = vld [vmem:[%s3461_s9 + $0x64] sm:$0xf] }
 0xdd9   :  { %v1729_v46 = vunpack.c.l.b16 %v1719_v44  ;;  %v2358_v44 = vor.u32 %v2448_v57, %v2357_v19 }
 0xddb   :  { %v1730_v16 = vpack.c.b16 %v1729_v46, %v1728_v45  ;;  %v2359_v45 = vld [vmem:[%s3461_s9 + $0x68] sm:$0xf0] }
 0xddc   :  { %v1685_v24 = vpop.f32.mrf.mxu2  ;;  %v2362_v46 = vor.u32 %v2447_v43, %v2359_v45 }
 0xddd   :  { %2323 = vmatmul.msk.bf16.vlgmr.msra.gmra.mxu0 %vm448_vm8, %v1730_v16  ;;  %v1722_v48 = vpack.c.bf16 %v1685_v24, %v1685_v24  ;;  %v2349_v16 = vld [vmem:[%s3461_s9 + $0x50] sm:$0xf]  ;;  %v2446_v24 = vld [vmem:[%s3461_s9 + $0x54] sm:$0xf0] }
 0xdde   :  { %1954 = vmatpush.bf16.msrb.mxu1 %v2362_v46 }
 0xddf   :  { %v1784_v2 = vunpack.c.l.b16 %v1722_v48  ;;  %v2445_v48 = vld [vmem:[%s3461_s9 + $0x54] sm:$0xf] }
 0xde4   :  { %v1687_v49 = vpop.f32.mrf.mxu2  ;;  %v1713_v33 = vpop.f32.mrf.mxu3 }
 0xde5   :  { %v1723_v0 = vpack.c.bf16 %v1687_v49, %v1687_v49  ;;  %v1724_v55 = vpack.c.bf16 %v1713_v33, %v1713_v33  ;;  %v2350_v49 = vor.u32 %v2446_v24, %v2349_v16  ;;  %v2351_v33 = vld [vmem:[%s3461_s9 + $0x58] sm:$0xf0] }
 0xde6   :  { %v1657_v51 = vpop.f32.mrf.mxu1 }
 0xde7   :  { %v1785_v53 = vunpack.c.l.b16 %v1723_v0  ;;  %v1720_v56 = vpack.c.bf16 %v1657_v51, %v1657_v51  ;;  %v1812_v60 = vunpack.c.l.b16 %v1724_v55  ;;  %v2354_v0 = vor.u32 %v2445_v48, %v2351_v33 }
 0xde9   :  { %v1786_v54 = vpack.c.b16 %v1785_v53, %v1784_v2  ;;  %v1756_v1 = vunpack.c.l.b16 %v1720_v56  ;;  %1955 = vmatpush.bf16.msrb.mxu1 %v2354_v0  ;;  %v2341_v2 = vld [vmem:[%s3461_s9 + $0x40] sm:$0xf]  ;;  %v2444_v53 = vld [vmem:[%s3461_s9 + $0x44] sm:$0xf0]  ;;  %v2343_v56 = vld [vmem:[%s3461_s9 + $0x48] sm:$0xf0] }
 0xdeb   :  { %2333 = vmatmul.msk.bf16.vlgmr.msra.gmra.mxu2 %vm448_vm8, %v1786_v54  ;;  %v2443_v54 = vld [vmem:[%s3461_s9 + $0x44] sm:$0xf] }
 0xdec   :  { %v1715_v35 = vpop.f32.mrf.mxu3 }
 0xded   :  { %v1725_v59 = vpack.c.bf16 %v1715_v35, %v1715_v35  ;;  %v2342_v35 = vor.u32 %v2444_v53, %v2341_v2 }
 0xdee   :  { %v1659_v52 = vpop.f32.mrf.mxu1 }
 0xdef   :  { %v1813_v62 = vunpack.c.l.b16 %v1725_v59  ;;  %v1721_v63 = vpack.c.bf16 %v1659_v52, %v1659_v52  ;;  %v2346_v59 = vor.u32 %v2443_v54, %v2343_v56 }
 0xdf1   :  { %v1814_v38 = vpack.c.b16 %v1813_v62, %v1812_v60  ;;  %v1757_v50 = vunpack.c.l.b16 %v1721_v63  ;;  %1956 = vmatpush.bf16.msrb.mxu1 %v2346_v59 }
 0xdf3   :  { %v1758_v39 = vpack.c.b16 %v1757_v50, %v1756_v1  ;;  %2338 = vmatmul.msk.bf16.vlgmr.msrb.gmra.mxu3 %vm448_vm8, %v1814_v38 }
 0xdf5   :  { %2328 = vmatmul.msk.bf16.vlgmr.msra.gmra.mxu1 %vm448_vm8, %v1758_v39 }
 0xe5a   :  { %v1749_v58 = vpop.f32.mrf.mxu0 }
 0xe5b   :  { %v1838_v9 = vsel %vm140_vm0, %v1749_v58, 0.0 }
 0xe62   :  { %v1751_v17 = vpop.f32.mrf.mxu0 }
 0xe63   :  { %v1845_v25 = vsel %vm140_vm0, %v1751_v17, 0.0 }
 0xe6e   :  { %v1805_v7 = vpop.f32.mrf.mxu2 }
 0xe6f   :  { %v1841_v13 = vsel %vm140_vm0, %v1805_v7, 0.0 }
 0xe72   :  { %v1777_v8 = vpop.f32.mrf.mxu1 }
 0xe73   :  { %v1839_v10 = vsel %vm140_vm0, %v1777_v8, 0.0 }
 0xe74   :  { %v1840_v11 = vadd.f32 %v1839_v10, %v1838_v9 }
 0xe76   :  { %v1833_v12 = vpop.f32.mrf.mxu3  ;;  %v1842_v15 = vadd.f32 %v1841_v13, %v1840_v11  ;;  %v1807_v22 = vpop.f32.mrf.mxu2 }
 0xe77   :  { %v1843_v40 = vsel %vm140_vm0, %v1833_v12, 0.0  ;;  %v1848_v29 = vsel %vm140_vm0, %v1807_v22, 0.0 }
 0xe78   :  { %v1844_v20 = vadd.f32 %v1843_v40, %v1842_v15  ;;  %v1888_v40 = vperm.slane %v3203_v42, 3  ;;  %v2465_v42 = vld [vmem:[%s3462_s10 + $0x70] sm:$0xff] }
 0xe7a   :  { %v3344_v23 = vadd.f32 %v1844_v20, %v3127_v14  ;;  %v1779_v47 = vpop.f32.mrf.mxu1 }
 0xe7b   :  { %v1846_v26 = vsel %vm140_vm0, %v1779_v47, 0.0 }
 0xe7c   :  { %v1847_v27 = vadd.f32 %v1846_v26, %v1845_v25  ;;  %v1854_v28 = vmul.f32 %v3344_v23, %v3344_v23 }
 0xe7e   :  { %v1835_v41 = vpop.f32.mrf.mxu3  ;;  %v1849_v4 = vadd.f32 %v1848_v29, %v1847_v27  ;;  %v1856_v21 = vsel %vm140_vm0, %v1854_v28, 0.0  ;;  %v2466_v27 = vld [vmem:[%s3462_s10 + $0x78] sm:$0xff]  ;;  %v2464_v28 = vld [vmem:[%s3462_s10 + $0x68] sm:$0xff]  ;;  %v2463_v29 = vld [vmem:[%s3462_s10 + $0x60] sm:$0xff] }
 0xe7f   :  { %v1850_v61 = vsel %vm140_vm0, %v1835_v41, 0.0  ;;  %1857 = vadd.xlane.f32.xlu1 %v1856_v21  ;;  %2054 = vmatpush.bf16.msrb.mxu2 %v2466_v27  ;;  %v2462_v41 = vld [vmem:[%s3462_s10 + $0x58] sm:$0xff] }
 0xe80   :  { %v1851_v14 = vadd.f32 %v1850_v61, %v1849_v4  ;;  %v2461_v4 = vld [vmem:[%s3462_s10 + $0x50] sm:$0xff] }
 0xe82   :  { %v3354_v34 = vadd.f32 %v1851_v14, %v3133_v31  ;;  %v2366_v31 = vor.u32 %v2450_v36, %v2365_v6  ;;  %v2460_v14 = vld [vmem:[%s3462_s10 + $0x48] sm:$0xff] }
 0xe83   :  { %2055 = vmatpush.bf16.msrb.mxu2 %v2465_v42 }
 0xe84   :  { %v1855_v32 = vmul.f32 %v3354_v34, %v3354_v34  ;;  %1939 = vmatpush.bf16.msrb.mxu0 %v2366_v31 }
 0xe86   :  { %v1859_v5 = vsel %vm140_vm0, %v1855_v32, 0.0  ;;  %v2459_v32 = vld [vmem:[%s3462_s10 + $0x40] sm:$0xff] }
 0xe87   :  { %1860 = vadd.xlane.f32.xlu2 %v1859_v5  ;;  %2056 = vmatpush.bf16.msrb.mxu2 %v2464_v28  ;;  %v2679_v28 = vld [vmem:[%s3457_s5] sm:$0x1f]  ;;  %s2115_s5 = sshll.u32 %s3463_s11, 4  ;;  %s2116_s5 = int_to_ptr.hbm [resolvable:$true] %s2115_s5 }
 0xe88   :  { %1940 = vmatpush.bf16.msrb.mxu0 %v2358_v44 }
 0xe8b   :  { %2057 = vmatpush.bf16.msrb.mxu2 %v2463_v29  ;;  %v2104_v29 = vperm.slane %v2679_v28, 4 }
 0xe8c   :  { %1941 = vmatpush.bf16.msrb.mxu0 %v2350_v49 }
 0xe8f   :  { %2058 = vmatpush.bf16.msrb.mxu2 %v2462_v41 }
 0xe90   :  { %1942 = vmatpush.bf16.msrb.mxu0 %v2342_v35 }
 0xe93   :  { %2059 = vmatpush.bf16.msrb.mxu2 %v2461_v4 }
 0xe97   :  { %2060 = vmatpush.bf16.msrb.mxu2 %v2460_v14 }
 0xe9b   :  { %2061 = vmatpush.bf16.msrb.mxu2 %v2459_v32 }
 0xef2   :  { %v1858_v51 = vpop.xlane.xlu1 %1857 }
 0xef3   :  { %v1862_v55 = vmul.f32 %v1858_v51, %v2826_v30 }
 0xef5   :  { %v1864_v52 = vadd.f32 1e-06, %v1862_v55 }
 0xef7   :  { %2651 = vrsqrt.f32 %v1864_v52  ;;  %vm1872_vm15 = vweird.f32 %v1864_v52 }
 0xefa   :  { %v1861_v60 = vpop.xlane.xlu2 %1860 }
 0xefb   :  { %v1863_v62 = vmul.f32 %v1861_v60, %v2826_v30 }
 0xefd   :  { %v2652_v63 = vpop.eup %2651  ;;  %v1865_v1 = vadd.f32 1e-06, %v1863_v62 }
 0xefe   :  { %v1867_v38 = vmul.f32 %v2652_v63, %v1864_v52  ;;  %vm1873_vm8 = vweird.f32 %v2652_v63 }
 0xeff   :  { %2653 = vrsqrt.f32 %v1865_v1  ;;  %vm1874_vm1 = vmor %vm1872_vm15, %vm1873_vm8  ;;  %vm1882_vm3 = vweird.f32 %v1865_v1 }
 0xf00   :  { %v1868_v50 = vmul.f32 %v2652_v63, %v1867_v38 }
 0xf02   :  { %v1869_v39 = vmul.f32 0.5, %v1868_v50 }
 0xf04   :  { %v1870_v58 = vsub.f32 1.5, %v1869_v39 }
 0xf05   :  { %v2654_v7 = vpop.eup %2653 }
 0xf06   :  { %v1877_v8 = vmul.f32 %v2654_v7, %v1865_v1  ;;  %v1871_v9 = vmul.f32 %v2652_v63, %v1870_v58  ;;  %vm1883_vm2 = vweird.f32 %v2654_v7 }
 0xf07   :  { %vm1884_vm4 = vmor %vm1882_vm3, %vm1883_vm2 }
 0xf08   :  { %v1878_v10 = vmul.f32 %v2654_v7, %v1877_v8  ;;  %v1875_v13 = vsel %vm1874_vm1, %v2652_v63, %v1871_v9 }
 0xf09   :  { %v1886_v17 = vmul.f32 %v1875_v13, %v3344_v23 }
 0xf0a   :  { %v1879_v11 = vmul.f32 0.5, %v1878_v10 }
 0xf0b   :  { %v1889_v47 = vmul.f32 %v1888_v40, %v1886_v17 }
 0xf0c   :  { %v1880_v12 = vsub.f32 1.5, %v1879_v11 }
 0xf0e   :  { %v1881_v15 = vmul.f32 %v2654_v7, %v1880_v12 }
 0xf10   :  { %v1885_v20 = vsel %vm1884_vm4, %v2654_v7, %v1881_v15 }
 0xf11   :  { %v1887_v22 = vmul.f32 %v1885_v20, %v3354_v34 }
 0xf13   :  { %v1890_v25 = vmul.f32 %v1888_v40, %v1887_v22 }
 0xf15   :  { %v1891_v26 = vpack.c.bf16 %v1890_v25, %v1889_v47 }
 0xf17   :  { %2371 = vmatmul.msk.bf16.vlgmr.msrb.gmra.mxu0 %vm140_vm0, %v1891_v26  ;;  %2372 = vmatmul.msk.bf16.vlgmr.msrb.gmra.mxu1 %vm140_vm0, %v1891_v26 }
 0xf94   :  { %v1944_v21 = vpop.f32.mrf.mxu0  ;;  %v1958_v48 = vpop.f32.mrf.mxu1 }
 0xf95   :  { %v2373_v61 = vmul.f32 -1.442695, %v1944_v21 }
 0xf97   :  { %2655 = vpow2.f32 %v2373_v61 }
 0xf9c   :  { %v1946_v5 = vpop.f32.mrf.mxu0  ;;  %v1960_v62 = vpop.f32.mrf.mxu1 }
 0xf9d   :  { %v2656_v6 = vpop.eup %2655  ;;  %v2374_v36 = vmul.f32 -1.442695, %v1946_v5 }
 0xf9e   :  { %v1969_v3 = vadd.f32 1.0, %v2656_v6 }
 0xf9f   :  { %2657 = vpow2.f32 %v2374_v36 }
 0xfa0   :  { %2659 = vrcp.f32 %v1969_v3  ;;  %v1982_v46 = vand.u32 2147483648, %v1969_v3  ;;  %vm1976_vm6 = vweird.f32 %v1969_v3  ;;  %v1980_v16 = vand.u32 2147483647, %v1969_v3 }
 0xfa2   :  { %v1983_v0 = vor.u32 1.1754944e-38, %v1982_v46  ;;  %vm1981_vm9 = vcmp.eq.f32.partialorder %v1980_v16, 8.507059e+37 }
 0xfa5   :  { %v2658_v31 = vpop.eup %2657 }
 0xfa6   :  { %v2660_v37 = vpop.eup %2659  ;;  %v1970_v18 = vadd.f32 1.0, %v2658_v31 }
 0xfa7   :  { %v1972_v19 = vmul.f32 %v2660_v37, %v1969_v3  ;;  %vm1977_vm5 = vweird.f32 %v2660_v37 }
 0xfa8   :  { %2661 = vrcp.f32 %v1970_v18  ;;  %vm1978_vm7 = vmor %vm1976_vm6, %vm1977_vm5  ;;  %v1997_v51 = vand.u32 2147483648, %v1970_v18  ;;  %v1995_v53 = vand.u32 2147483647, %v1970_v18  ;;  %vm1991_vm11 = vweird.f32 %v1970_v18 }
 0xfa9   :  { %v1973_v57 = vsub.f32 1.0, %v1972_v19 }
 0xfaa   :  { %v1998_v35 = vor.u32 1.1754944e-38, %v1997_v51  ;;  %vm1996_vm13 = vcmp.eq.f32.partialorder %v1995_v53, 8.507059e+37 }
 0xfab   :  { %v1974_v43 = vmul.f32 %v2660_v37, %v1973_v57 }
 0xfad   :  { %v1975_v44 = vadd.f32 %v2660_v37, %v1974_v43 }
 0xfae   :  { %v2662_v45 = vpop.eup %2661 }
 0xfaf   :  { %v1987_v24 = vmul.f32 %v2662_v45, %v1970_v18  ;;  %v1979_v49 = vsel %vm1978_vm7, %v2660_v37, %v1975_v44  ;;  %vm1992_vm10 = vweird.f32 %v2662_v45 }
 0xfb0   :  { %v1984_v54 = vsel %vm1981_vm9, %v1983_v0, %v1979_v49  ;;  %vm1993_vm12 = vmor %vm1991_vm11, %vm1992_vm10 }
 0xfb1   :  { %v1988_v33 = vsub.f32 1.0, %v1987_v24  ;;  %v2001_v56 = vmul.f32 %v1984_v54, %v1944_v21 }
 0xfb3   :  { %v1989_v2 = vmul.f32 %v2662_v45, %v1988_v33  ;;  %v2003_v63 = vmul.f32 %v2001_v56, %v1958_v48 }
 0xfb5   :  { %v1990_v55 = vadd.f32 %v2662_v45, %v1989_v2 }
 0xfb7   :  { %v1994_v59 = vsel %vm1993_vm12, %v2662_v45, %v1990_v55 }
 0xfb8   :  { %v1999_v52 = vsel %vm1996_vm13, %v1998_v35, %v1994_v59 }
 0xfb9   :  { %v2002_v60 = vmul.f32 %v1999_v52, %v1946_v5 }
 0xfbb   :  { %v2004_v1 = vmul.f32 %v2002_v60, %v1960_v62 }
 0xfbd   :  { %v2005_v38 = vpack.c.bf16 %v2004_v1, %v2003_v63 }
 0xfbf   :  { %2062 = vmatmul.bf16.vlgmr.msrb.gmra.mxu2 %v2005_v38 }
0x1042   :  { %v2063_v50 = vpop.f32.mrf.mxu2 }
0x1043   :  { %v2068_v39 = vadd.f32 %v2063_v50, %v3344_v23 }
0x1045   :  { %v2070_v58 = vmul.f32 %v2068_v39, %v2068_v39 }
0x1047   :  { %v2072_v7 = vsel %vm140_vm0, %v2070_v58, 0.0 }
0x1048   :  { %2073 = vadd.xlane.f32.xlu1 %v2072_v7 }
0x104a   :  { %v2065_v8 = vpop.f32.mrf.mxu2 }
0x104b   :  { %v2069_v9 = vadd.f32 %v2065_v8, %v3354_v34 }
0x104d   :  { %v2071_v10 = vmul.f32 %v2069_v9, %v2069_v9 }
0x104f   :  { %v2075_v11 = vsel %vm140_vm0, %v2071_v10, 0.0 }
0x1050   :  { %2076 = vadd.xlane.f32.xlu1 %v2075_v11 }
0x10bb   :  { %v2074_v13 = vpop.xlane.xlu1 %2073 }
0x10bc   :  { %v2078_v12 = vmul.f32 %v2074_v13, %v2826_v30 }
0x10be   :  { %v2080_v15 = vadd.f32 1e-06, %v2078_v12 }
0x10c0   :  { %2663 = vrsqrt.f32 %v2080_v15  ;;  %vm2088_vm8 = vweird.f32 %v2080_v15 }
0x10c3   :  { %v2077_v40 = vpop.xlane.xlu1 %2076 }
0x10c4   :  { %v2079_v17 = vmul.f32 %v2077_v40, %v2826_v30 }
0x10c6   :  { %v2664_v23 = vpop.eup %2663  ;;  %v2081_v20 = vadd.f32 1e-06, %v2079_v17 }
0x10c7   :  { %v2083_v22 = vmul.f32 %v2664_v23, %v2080_v15  ;;  %vm2089_vm14 = vweird.f32 %v2664_v23 }
0x10c8   :  { %2665 = vrsqrt.f32 %v2081_v20  ;;  %vm2090_vm15 = vmor %vm2088_vm8, %vm2089_vm14  ;;  %vm2098_vm2 = vweird.f32 %v2081_v20 }
0x10c9   :  { %v2084_v47 = vmul.f32 %v2664_v23, %v2083_v22 }
0x10cb   :  { %v2085_v25 = vmul.f32 0.5, %v2084_v47 }
0x10cd   :  { %v2086_v26 = vsub.f32 1.5, %v2085_v25 }
0x10ce   :  { %v2666_v34 = vpop.eup %2665 }
0x10cf   :  { %v2087_v27 = vmul.f32 %v2664_v23, %v2086_v26  ;;  %v2093_v42 = vmul.f32 %v2666_v34, %v2081_v20  ;;  %vm2099_vm1 = vweird.f32 %v2666_v34 }
0x10d0   :  { %vm2100_vm3 = vmor %vm2098_vm2, %vm2099_vm1 }
0x10d1   :  { %v2091_v41 = vsel %vm2090_vm15, %v2664_v23, %v2087_v27  ;;  %v2094_v30 = vmul.f32 %v2666_v34, %v2093_v42 }
0x10d2   :  { %v2102_v4 = vmul.f32 %v2091_v41, %v2068_v39 }
0x10d3   :  { %v2095_v21 = vmul.f32 0.5, %v2094_v30 }
0x10d4   :  { %v2105_v61 = vmul.f32 %v2104_v29, %v2102_v4 }
0x10d5   :  { %v2096_v14 = vsub.f32 1.5, %v2095_v21 }
0x10d6   :  { %2107 = vst.msk [vmem:[#allocation2] sm:$0xff] %vm140_vm0, %v2105_v61 }
0x10d7   :  { %v2097_v32 = vmul.f32 %v2666_v34, %v2096_v14 }
0x10d9   :  { %v2101_v5 = vsel %vm2100_vm3, %v2666_v34, %v2097_v32 }
0x10da   :  { %v2103_v6 = vmul.f32 %v2101_v5, %v2069_v9 }
0x10dc   :  { %v2106_v36 = vmul.f32 %v2104_v29, %v2103_v6 }
0x10de   :  { %2108 = vst.msk [vmem:[#allocation2 + $0x8] sm:$0xff] %vm140_vm0, %v2106_v36 }
0x10df   :  { %2121 = dma.vmem_to_hbm [thread:$0]  %s2114_s16, 256, %s2116_s5, [#allocation3], %s2712_s6, %s2712_s6, %s2713_s18  }
0x10e0   :  { %2704 = dma.done.wait [#allocation3], 256  }
0x10e1   :  { %2705 = vsyncadd [#allocation3], 4294967040 }
0x10e2   :  { %2126 = vsyncpa [#allocation3], 1 }

</bundles_post_ra>
